<compile_context>
chip_gen: v5e
topology: v5e:2x2
jax: 0.10.0
libtpu: 0.0.40
codegen_flags: <defaults>
</compile_context>

<pallas_src>
import numpy as np

import jax
import jax.numpy as jnp
from jax.experimental import pallas as pl
from jax.experimental.pallas import tpu as pltpu


_SCALE_RATES = (64, 32, 16, 8)


# ---------------------------------------------------------------------------
# Static interpolation / pooling matrices (host-side constants)
# ---------------------------------------------------------------------------

def _bilinear_matrix(out_size: int, in_size: int) -> np.ndarray:
    """W (out_size, in_size) s.t. W @ v == 1-D bilinear upsample, align_corners=True."""
    if out_size == 1:
        src = np.zeros((1,), np.float64)
    else:
        src = np.arange(out_size, dtype=np.float64) * ((in_size - 1) / (out_size - 1))
    lo = np.clip(np.floor(src).astype(np.int64), 0, in_size - 1)
    hi = np.clip(lo + 1, 0, in_size - 1)
    frac = src - lo
    w = np.zeros((out_size, in_size), np.float64)
    w[np.arange(out_size), lo] += 1.0 - frac
    w[np.arange(out_size), hi] += frac
    return w


def _avgpool_matrix(in_size: int, s: int) -> np.ndarray:
    """A (in_size//s, in_size) s.t. A @ v == 1-D average pool (kernel=stride=s)."""
    out_size = in_size // s
    a = np.zeros((out_size, in_size), np.float64)
    for i in range(out_size):
        a[i, i * s:(i + 1) * s] = 1.0 / s
    return a


# ---------------------------------------------------------------------------
# Generic row-batched matmul kernel:  out[i*TB:(i+1)*TB, :] = X_block @ W
# ---------------------------------------------------------------------------

def _rowblock_matmul_kernel(x_ref, w_ref, o_ref):
    # x_ref: (TB, K)   w_ref: (K, N)   o_ref: (TB, N)
    o_ref[...] = jnp.dot(
        x_ref[...], w_ref[...], preferred_element_type=jnp.float32
    ).astype(o_ref.dtype)


def _row_matmul(x, w, out_dtype, tb, *, vmem_limit_bytes=48 * 1024 * 1024):
    b, k = x.shape
    k2, n = w.shape
    assert k == k2
    tb = max(8, min(int(tb), b))
    tb = ((tb + 7) // 8) * 8                       # sublane-aligned row block
    grid = (pl.cdiv(b, tb),)

    flops = 2 * b * k * n
    bytes_accessed = (b * k * x.dtype.itemsize
                      + k * n * w.dtype.itemsize
                      + b * n * jnp.dtype(out_dtype).itemsize)

    return pl.pallas_call(
        _rowblock_matmul_kernel,
        out_shape=jax.ShapeDtypeStruct((b, n), out_dtype),
        grid_spec=pltpu.PrefetchScalarGridSpec(
            num_scalar_prefetch=0,
            grid=grid,
            in_specs=[
                pl.BlockSpec((tb, k), lambda i: (i, 0)),
                pl.BlockSpec((k, n), lambda i: (0, 0)),
            ],
            out_specs=pl.BlockSpec((tb, n), lambda i: (i, 0)),
        ),
        compiler_params=pltpu.CompilerParams(
            dimension_semantics=("parallel",),
            vmem_limit_bytes=vmem_limit_bytes,
        ),
        cost_estimate=pl.CostEstimate(
            flops=flops, transcendentals=0, bytes_accessed=bytes_accessed),
    )(x, w)


# ---------------------------------------------------------------------------
# pyramid_pooling_64 forward
# ---------------------------------------------------------------------------

def pyramid_pooling_64(x, conv_weights, conv_biases, scale_rates=_SCALE_RATES,
                       *, tb_pool=256, tb_up=128):
    """x: (N, C_in, H, W); conv_weights[k]: (C_p, C_in); conv_biases[k]: (C_p,)."""
    n, c_in, h, w = x.shape
    n_scales = len(scale_rates)
    c_p = conv_weights[0].shape[0]
    for cw, cb in zip(conv_weights, conv_biases):
        assert cw.shape == (c_p, c_in) and cb.shape == (c_p,)
    for s in scale_rates:
        assert h % s == 0 and w % s == 0, "spatial dims must be divisible by scale rates"

    hw = h * w
    sizes = [(h // s) * (w // s) for s in scale_rates]
    l_cat = int(sum(sizes))
    offs = [int(v) for v in np.cumsum([0] + sizes)[:-1]]

    # bf16 inputs stay bf16 into the MXU; f32 otherwise. Accumulation is f32.
    cdtype = jnp.bfloat16 if x.dtype == jnp.bfloat16 else jnp.float32

    # --- static matrices: stacked pooling krons and block-diagonal upsample kron
    p_rows = []
    u_blk = np.zeros((l_cat, n_scales * hw), np.float64)
    for k_idx, s in enumerate(scale_rates):
        ah = _avgpool_matrix(h, s)                  # (h/s, h)
        aw = _avgpool_matrix(w, s)                  # (w/s, w)
        p_rows.append(np.kron(ah, aw))              # (L_s, hw)
        wh = _bilinear_matrix(h, h // s)            # (h, h/s)
        ww_ = _bilinear_matrix(w, w // s)           # (w, w/s)
        u_s = np.kron(wh, ww_)                      # (hw, L_s)
        u_blk[offs[k_idx]:offs[k_idx] + sizes[k_idx],
              k_idx * hw:(k_idx + 1) * hw] = u_s.T
    p_t = jnp.asarray(np.concatenate(p_rows, axis=0).T, dtype=cdtype)   # (hw, l_cat)
    u_blk = jnp.asarray(u_blk, dtype=cdtype)                            # (l_cat, 4*hw)

    # --- stage 1 (Pallas): fused 4-scale average pooling, one matmul ---------
    x_rows = x.reshape(n * c_in, hw).astype(cdtype)
    pooled_cat = _row_matmul(x_rows, p_t, jnp.float32, tb_pool)         # (n*c_in, l_cat)

    # --- stage 2 (plain JAX): per-scale 1x1 conv on tiny pooled maps ---------
    # TODO(synk): 1x1 convs (+ final channel concat) run in plain JAX; they act
    # on <=85-element pooled maps so their cost is negligible vs. the kernels.
    pooled = pooled_cat.reshape(n, c_in, l_cat)
    z_parts = []
    for k_idx in range(n_scales):
        p_s = pooled[:, :, offs[k_idx]:offs[k_idx] + sizes[k_idx]]      # (n, c_in, L_s)
        w_s = conv_weights[k_idx].astype(jnp.float32)
        b_s = conv_biases[k_idx].astype(jnp.float32)
        z_parts.append(jnp.einsum('oc,ncl->nol', w_s, p_s) + b_s[None, :, None])
    z_rows = jnp.concatenate(z_parts, axis=2).reshape(n * c_p, l_cat).astype(cdtype)

    # --- stage 3 (Pallas): batched kron-form bilinear upsample, all scales ---
    y_rows = _row_matmul(z_rows, u_blk, x.dtype, tb_up)                 # (n*c_p, 4*hw)

    # --- layout plumbing back to NCHW with torch.cat channel ordering --------
    y = y_rows.reshape(n, c_p, n_scales, h, w)
    y = jnp.transpose(y, (0, 2, 1, 3, 4)).reshape(n, n_scales * c_p, h, w)
    return y


# ---------------------------------------------------------------------------
# Pure-JAX reference (independent gather/lerp implementation)
# ---------------------------------------------------------------------------

def _reference(x, conv_weights, conv_biases, scale_rates=_SCALE_RATES):
    def avg_pool(v, s):
        nn_, cc, hh, ww = v.shape
        return v.reshape(nn_, cc, hh // s, s, ww // s, s).mean(axis=(3, 5))

    def upsample(v, s):
        nn_, cc, h_in, w_in = v.shape
        h_out, w_out = h_in * s, w_in * s

        def grid1d(o, i):
            if o == 1:
                src = jnp.zeros((1,), jnp.float32)
            else:
                src = jnp.arange(o, dtype=jnp.float32) * ((i - 1) / (o - 1))
            lo = jnp.clip(jnp.floor(src), 0, i - 1).astype(jnp.int32)
            hi = jnp.minimum(lo + 1, i - 1)
            fr = src - lo.astype(jnp.float32)
            return lo, hi, fr

        lo_h, hi_h, fr_h = grid1d(h_out, h_in)
        lo_w, hi_w, fr_w = grid1d(w_out, w_in)
        vr = (v[:, :, lo_h, :] * (1.0 - fr_h)[None, None, :, None]
              + v[:, :, hi_h, :] * fr_h[None, None, :, None])
        return (vr[:, :, :, lo_w] * (1.0 - fr_w)[None, None, None, :]
                + vr[:, :, :, hi_w] * fr_w[None, None, None, :])

    xf = x.astype(jnp.float32)
    outs = []
    for s, w_s, b_s in zip(scale_rates, conv_weights, conv_biases):
        p = avg_pool(xf, s)
        c = (jnp.einsum('oc,nchw->nohw', w_s.astype(jnp.float32), p)
             + b_s.astype(jnp.float32)[None, :, None, None])
        outs.append(upsample(c, s))
    return jnp.concatenate(outs, axis=1).astype(x.dtype)


if __name__ == "__main__":
    key = jax.random.PRNGKey(0)
    n, c_in, c_p, h, w = 2, 4, 8, 64, 64          # H, W must be divisible by 64
    scale_rates = (64, 32, 16, 8)

    keys = jax.random.split(key, 1 + 2 * len(scale_rates))
    x = jax.random.normal(keys[0], (n, c_in, h, w), dtype=jnp.float32)
    conv_ws, conv_bs = [], []
    for i in range(len(scale_rates)):
        conv_ws.append(jax.random.normal(keys[1 + 2 * i], (c_p, c_in), jnp.float32) * 0.5)
        conv_bs.append(jax.random.normal(keys[2 + 2 * i], (c_p,), jnp.float32) * 0.1)

    # small tb_up so the test exercises a multi-step ("parallel") grid
    y = pyramid_pooling_64(x, conv_ws, conv_bs, scale_rates, tb_pool=256, tb_up=8)
    jax.block_until_ready(y)

    y_ref = _reference(x, conv_ws, conv_bs, scale_rates)
    assert y.shape == (n, len(scale_rates) * c_p, h, w), y.shape
    assert jnp.allclose(y, y_ref, atol=1e-3, rtol=1e-3), \
        float(jnp.max(jnp.abs(y - y_ref)))

    print("KERNEL_OK")
</pallas_src>

<mosaic_0001>
module attributes {stable_mosaic.version = 11 : i64} {
  func.func @_rowblock_matmul_kernel(%arg0: i32, %arg1: memref<8x4096xf32, #tpu.memory_space<vmem>>, %arg2: memref<4096x85xf32, #tpu.memory_space<vmem>>, %arg3: memref<8x85xf32, #tpu.memory_space<vmem>>) attributes {dimension_semantics = [#tpu.dimension_semantics<parallel>], iteration_bounds = array<i64: 1>, scalar_prefetch = 0 : i64, scratch_operands = 0 : i64, tpu.core_type = #tpu.core_type<tc>, window_params = [{transform_indices = @transform_0, window_bounds = array<i64: 8, 4096>}, {pipeline_mode = #tpu.pipeline_mode<synchronous>, transform_indices = @transform_1, window_bounds = array<i64: 4096, 85>}, {transform_indices = @transform_2, window_bounds = array<i64: 8, 85>}]} {
    %c0 = arith.constant 0 : index
    %c0_0 = arith.constant 0 : index
    %0 = vector.load %arg1[%c0, %c0_0] : memref<8x4096xf32, #tpu.memory_space<vmem>>, vector<8x4096xf32>
    %c0_1 = arith.constant 0 : index
    %c0_2 = arith.constant 0 : index
    %1 = vector.load %arg2[%c0_1, %c0_2] : memref<4096x85xf32, #tpu.memory_space<vmem>>, vector<4096x85xf32>
    %cst = arith.constant dense<0.000000e+00> : vector<8x85xf32>
    %2 = tpu.matmul %0, %1, %cst {dimension_numbers = #tpu.dot_dimension_numbers<[1], [0], [0], [1], [0, 0, 1, 1], [], []>} : vector<8x4096xf32>, vector<4096x85xf32>, vector<8x85xf32> -> vector<8x85xf32>
    %c0_3 = arith.constant 0 : index
    %c0_4 = arith.constant 0 : index
    %3 = vector.load %arg3[%c0_3, %c0_4] : memref<8x85xf32, #tpu.memory_space<vmem>>, vector<8x85xf32>
    tpu.vector_store %arg3[%c0_3, %c0_4], %2 {strides = array<i32>} : memref<8x85xf32, #tpu.memory_space<vmem>>, vector<8x85xf32>,
    return
  }
  func.func @transform_0(%arg0: i32) -> (i32, i32) {
    %c0_i32 = arith.constant 0 : i32
    %c0_i32_0 = arith.constant 0 : i32
    return %arg0, %c0_i32 : i32, i32
  }
  func.func @transform_1(%arg0: i32) -> (i32, i32) {
    %c0_i32 = arith.constant 0 : i32
    %c0_i32_0 = arith.constant 0 : i32
    %c0_i32_1 = arith.constant 0 : i32
    return %c0_i32, %c0_i32_0 : i32, i32
  }
  func.func @transform_2(%arg0: i32) -> (i32, i32) {
    %c0_i32 = arith.constant 0 : i32
    %c0_i32_0 = arith.constant 0 : i32
    return %arg0, %c0_i32 : i32, i32
  }
}

</mosaic_0001>

<bundles_post_ra>
// kernel: tpu_custom_call.1
= control target key start
LH: loop header
LB: loop body
LE: loop exit
PB: predicated region body
PF: predicated region fallthrough
CT: control target
= control target key end

     0   :  { %s2892_s0 = inlined_call_operand.vmem [shape: f32[8,4096], index: 0, kind: input, shape index: {}]   ;;  %s2893_s1 = inlined_call_operand.vmem [shape: f32[4096,85], index: 1, kind: input, shape index: {}]   ;;  %s2894_s2 = inlined_call_operand.hbm [shape: f32[8,85], index: 2, kind: output, shape index: {}]  }
   0x1   :  { %v59_v0 = vld [vmem:[%s2893_s1 + $0x78] sm:$0xff]  ;;  %v58_v2 = vld [vmem:[%s2893_s1 + $0x70] sm:$0xff]  ;;  %v57_v6 = vld [vmem:[%s2893_s1 + $0x68] sm:$0xff] }
   0x2   :  { %v91_v1 = vld [vmem:[%s2893_s1 + $0x178] sm:$0xff]  ;;  %556 = vmatpush.msra.mxu0 %v59_v0  ;;  %v90_v4 = vld [vmem:[%s2893_s1 + $0x170] sm:$0xff]  ;;  %v89_v8 = vld [vmem:[%s2893_s1 + $0x168] sm:$0xff] }
   0x3   :  { %596 = vmatpush.msra.mxu2 %v91_v1  ;;  %v75_v3 = vld [vmem:[%s2893_s1 + $0xf8] sm:$0xff]  ;;  %v74_v7 = vld [vmem:[%s2893_s1 + $0xf0] sm:$0xff]  ;;  %v73_v10 = vld [vmem:[%s2893_s1 + $0xe8] sm:$0xff] }
   0x4   :  { %v107_v5 = vld [vmem:[%s2893_s1 + $0x1f8] sm:$0xff]  ;;  %576 = vmatpush.msra.mxu1 %v75_v3  ;;  %557 = vmatpush.msra.mxu0 %v58_v2  ;;  %v106_v9 = vld [vmem:[%s2893_s1 + $0x1f0] sm:$0xff]  ;;  %v56_v11 = vld [vmem:[%s2893_s1 + $0x60] sm:$0xff] }
   0x5   :  { %616 = vmatpush.msra.mxu3 %v107_v5  ;;  %597 = vmatpush.msra.mxu2 %v90_v4  ;;  %v88_v12 = vld [vmem:[%s2893_s1 + $0x160] sm:$0xff]  ;;  %v105_v13 = vld [vmem:[%s2893_s1 + $0x1e8] sm:$0xff]  ;;  %v55_v16 = vld [vmem:[%s2893_s1 + $0x58] sm:$0xff] }
   0x6   :  { %577 = vmatpush.msra.mxu1 %v74_v7  ;;  %558 = vmatpush.msra.mxu0 %v57_v6  ;;  %v72_v14 = vld [vmem:[%s2893_s1 + $0xe0] sm:$0xff]  ;;  %v87_v17 = vld [vmem:[%s2893_s1 + $0x158] sm:$0xff]  ;;  %v54_v20 = vld [vmem:[%s2893_s1 + $0x50] sm:$0xff] }
   0x7   :  { %617 = vmatpush.msra.mxu3 %v106_v9  ;;  %598 = vmatpush.msra.mxu2 %v89_v8  ;;  %v104_v15 = vld [vmem:[%s2893_s1 + $0x1e0] sm:$0xff]  ;;  %v71_v18 = vld [vmem:[%s2893_s1 + $0xd8] sm:$0xff]  ;;  %v86_v21 = vld [vmem:[%s2893_s1 + $0x150] sm:$0xff] }
   0x8   :  { %578 = vmatpush.msra.mxu1 %v73_v10  ;;  %559 = vmatpush.msra.mxu0 %v56_v11  ;;  %v103_v19 = vld [vmem:[%s2893_s1 + $0x1d8] sm:$0xff]  ;;  %v70_v22 = vld [vmem:[%s2893_s1 + $0xd0] sm:$0xff]  ;;  %v53_v24 = vld [vmem:[%s2893_s1 + $0x48] sm:$0xff] }
   0x9   :  { %618 = vmatpush.msra.mxu3 %v105_v13  ;;  %599 = vmatpush.msra.mxu2 %v88_v12  ;;  %v102_v23 = vld [vmem:[%s2893_s1 + $0x1d0] sm:$0xff]  ;;  %v85_v25 = vld [vmem:[%s2893_s1 + $0x148] sm:$0xff]  ;;  %v52_v28 = vld [vmem:[%s2893_s1 + $0x40] sm:$0xff] }
   0xa   :  { %579 = vmatpush.msra.mxu1 %v72_v14  ;;  %560 = vmatpush.msra.mxu0 %v55_v16  ;;  %v69_v26 = vld [vmem:[%s2893_s1 + $0xc8] sm:$0xff]  ;;  %v84_v29 = vld [vmem:[%s2893_s1 + $0x140] sm:$0xff]  ;;  %v51_v32 = vld [vmem:[%s2893_s1 + $0x38] sm:$0xff] }
   0xb   :  { %619 = vmatpush.msra.mxu3 %v104_v15  ;;  %600 = vmatpush.msra.mxu2 %v87_v17  ;;  %v101_v27 = vld [vmem:[%s2893_s1 + $0x1c8] sm:$0xff]  ;;  %v68_v30 = vld [vmem:[%s2893_s1 + $0xc0] sm:$0xff]  ;;  %v83_v33 = vld [vmem:[%s2893_s1 + $0x138] sm:$0xff] }
   0xc   :  { %580 = vmatpush.msra.mxu1 %v71_v18  ;;  %561 = vmatpush.msra.mxu0 %v54_v20  ;;  %v100_v31 = vld [vmem:[%s2893_s1 + $0x1c0] sm:$0xff]  ;;  %v67_v34 = vld [vmem:[%s2893_s1 + $0xb8] sm:$0xff]  ;;  %v50_v36 = vld [vmem:[%s2893_s1 + $0x30] sm:$0xff] }
   0xd   :  { %620 = vmatpush.msra.mxu3 %v103_v19  ;;  %601 = vmatpush.msra.mxu2 %v86_v21  ;;  %v99_v35 = vld [vmem:[%s2893_s1 + $0x1b8] sm:$0xff]  ;;  %v82_v37 = vld [vmem:[%s2893_s1 + $0x130] sm:$0xff]  ;;  %v49_v40 = vld [vmem:[%s2893_s1 + $0x28] sm:$0xff] }
   0xe   :  { %581 = vmatpush.msra.mxu1 %v70_v22  ;;  %562 = vmatpush.msra.mxu0 %v53_v24  ;;  %v66_v38 = vld [vmem:[%s2893_s1 + $0xb0] sm:$0xff]  ;;  %v81_v41 = vld [vmem:[%s2893_s1 + $0x128] sm:$0xff]  ;;  %v48_v44 = vld [vmem:[%s2893_s1 + $0x20] sm:$0xff] }
   0xf   :  { %621 = vmatpush.msra.mxu3 %v102_v23  ;;  %602 = vmatpush.msra.mxu2 %v85_v25  ;;  %v98_v39 = vld [vmem:[%s2893_s1 + $0x1b0] sm:$0xff]  ;;  %v65_v42 = vld [vmem:[%s2893_s1 + $0xa8] sm:$0xff]  ;;  %v80_v45 = vld [vmem:[%s2893_s1 + $0x120] sm:$0xff] }
  0x10   :  { %582 = vmatpush.msra.mxu1 %v69_v26  ;;  %563 = vmatpush.msra.mxu0 %v52_v28  ;;  %v97_v43 = vld [vmem:[%s2893_s1 + $0x1a8] sm:$0xff]  ;;  %v64_v46 = vld [vmem:[%s2893_s1 + $0xa0] sm:$0xff]  ;;  %v47_v48 = vld [vmem:[%s2893_s1 + $0x18] sm:$0xff] }
  0x11   :  { %622 = vmatpush.msra.mxu3 %v101_v27  ;;  %603 = vmatpush.msra.mxu2 %v84_v29  ;;  %v96_v47 = vld [vmem:[%s2893_s1 + $0x1a0] sm:$0xff]  ;;  %v79_v49 = vld [vmem:[%s2893_s1 + $0x118] sm:$0xff]  ;;  %v46_v52 = vld [vmem:[%s2893_s1 + $0x10] sm:$0xff] }
  0x12   :  { %583 = vmatpush.msra.mxu1 %v68_v30  ;;  %564 = vmatpush.msra.mxu0 %v51_v32  ;;  %v63_v50 = vld [vmem:[%s2893_s1 + $0x98] sm:$0xff]  ;;  %v78_v53 = vld [vmem:[%s2893_s1 + $0x110] sm:$0xff]  ;;  %v45_v56 = vld [vmem:[%s2893_s1 + $0x8] sm:$0xff] }
  0x13   :  { %623 = vmatpush.msra.mxu3 %v100_v31  ;;  %604 = vmatpush.msra.mxu2 %v83_v33  ;;  %v95_v51 = vld [vmem:[%s2893_s1 + $0x198] sm:$0xff]  ;;  %v62_v54 = vld [vmem:[%s2893_s1 + $0x90] sm:$0xff]  ;;  %v77_v57 = vld [vmem:[%s2893_s1 + $0x108] sm:$0xff] }
  0x14   :  { %584 = vmatpush.msra.mxu1 %v67_v34  ;;  %565 = vmatpush.msra.mxu0 %v50_v36  ;;  %v94_v55 = vld [vmem:[%s2893_s1 + $0x190] sm:$0xff]  ;;  %v61_v58 = vld [vmem:[%s2893_s1 + $0x88] sm:$0xff]  ;;  %v44_v60 = vld [vmem:[%s2893_s1] sm:$0xff] }
  0x15   :  { %624 = vmatpush.msra.mxu3 %v99_v35  ;;  %605 = vmatpush.msra.mxu2 %v82_v37  ;;  %v93_v59 = vld [vmem:[%s2893_s1 + $0x188] sm:$0xff]  ;;  %v76_v61 = vld [vmem:[%s2893_s1 + $0x100] sm:$0xff]  ;;  %v123_v62 = vld [vmem:[%s2893_s1 + $0x278] sm:$0xff] }
  0x16   :  { %585 = vmatpush.msra.mxu1 %v66_v38  ;;  %566 = vmatpush.msra.mxu0 %v49_v40  ;;  %v155_v63 = vld [vmem:[%s2893_s1 + $0x378] sm:$0xff]  ;;  %v60_v0 = vld [vmem:[%s2893_s1 + $0x80] sm:$0xff]  ;;  %v122_v2 = vld [vmem:[%s2893_s1 + $0x270] sm:$0xff] }
  0x17   :  { %625 = vmatpush.msra.mxu3 %v98_v39  ;;  %606 = vmatpush.msra.mxu2 %v81_v41  ;;  %v92_v1 = vld [vmem:[%s2893_s1 + $0x180] sm:$0xff]  ;;  %v139_v3 = vld [vmem:[%s2893_s1 + $0x2f8] sm:$0xff]  ;;  %v154_v4 = vld [vmem:[%s2893_s1 + $0x370] sm:$0xff] }
  0x18   :  { %586 = vmatpush.msra.mxu1 %v65_v42  ;;  %567 = vmatpush.msra.mxu0 %v48_v44  ;;  %v171_v5 = vld [vmem:[%s2893_s1 + $0x3f8] sm:$0xff]  ;;  %v121_v6 = vld [vmem:[%s2893_s1 + $0x268] sm:$0xff]  ;;  %v138_v7 = vld [vmem:[%s2893_s1 + $0x2f0] sm:$0xff] }
  0x19   :  { %626 = vmatpush.msra.mxu3 %v97_v43  ;;  %607 = vmatpush.msra.mxu2 %v80_v45  ;;  %v153_v8 = vld [vmem:[%s2893_s1 + $0x368] sm:$0xff]  ;;  %v170_v9 = vld [vmem:[%s2893_s1 + $0x3f0] sm:$0xff]  ;;  %v120_v10 = vld [vmem:[%s2893_s1 + $0x260] sm:$0xff] }
  0x1a   :  { %587 = vmatpush.msra.mxu1 %v64_v46  ;;  %568 = vmatpush.msra.mxu0 %v47_v48  ;;  %v137_v11 = vld [vmem:[%s2893_s1 + $0x2e8] sm:$0xff]  ;;  %v152_v12 = vld [vmem:[%s2893_s1 + $0x360] sm:$0xff]  ;;  %v119_v14 = vld [vmem:[%s2893_s1 + $0x258] sm:$0xff] }
  0x1b   :  { %627 = vmatpush.msra.mxu3 %v96_v47  ;;  %608 = vmatpush.msra.mxu2 %v79_v49  ;;  %v169_v13 = vld [vmem:[%s2893_s1 + $0x3e8] sm:$0xff]  ;;  %v136_v15 = vld [vmem:[%s2893_s1 + $0x2e0] sm:$0xff]  ;;  %v151_v16 = vld [vmem:[%s2893_s1 + $0x358] sm:$0xff] }
  0x1c   :  { %588 = vmatpush.msra.mxu1 %v63_v50  ;;  %569 = vmatpush.msra.mxu0 %v46_v52  ;;  %v168_v17 = vld [vmem:[%s2893_s1 + $0x3e0] sm:$0xff]  ;;  %v118_v18 = vld [vmem:[%s2893_s1 + $0x250] sm:$0xff]  ;;  %v135_v19 = vld [vmem:[%s2893_s1 + $0x2d8] sm:$0xff] }
  0x1d   :  { %628 = vmatpush.msra.mxu3 %v95_v51  ;;  %609 = vmatpush.msra.mxu2 %v78_v53  ;;  %v150_v20 = vld [vmem:[%s2893_s1 + $0x350] sm:$0xff]  ;;  %v167_v21 = vld [vmem:[%s2893_s1 + $0x3d8] sm:$0xff]  ;;  %v117_v22 = vld [vmem:[%s2893_s1 + $0x248] sm:$0xff] }
  0x1e   :  { %589 = vmatpush.msra.mxu1 %v62_v54  ;;  %570 = vmatpush.msra.mxu0 %v45_v56  ;;  %v134_v23 = vld [vmem:[%s2893_s1 + $0x2d0] sm:$0xff]  ;;  %v149_v24 = vld [vmem:[%s2893_s1 + $0x348] sm:$0xff]  ;;  %v116_v26 = vld [vmem:[%s2893_s1 + $0x240] sm:$0xff] }
  0x1f   :  { %629 = vmatpush.msra.mxu3 %v94_v55  ;;  %610 = vmatpush.msra.mxu2 %v77_v57  ;;  %v166_v25 = vld [vmem:[%s2893_s1 + $0x3d0] sm:$0xff]  ;;  %v133_v27 = vld [vmem:[%s2893_s1 + $0x2c8] sm:$0xff]  ;;  %v148_v28 = vld [vmem:[%s2893_s1 + $0x340] sm:$0xff] }
  0x20   :  { %590 = vmatpush.msra.mxu1 %v61_v58  ;;  %571 = vmatpush.msra.mxu0 %v44_v60  ;;  %v165_v29 = vld [vmem:[%s2893_s1 + $0x3c8] sm:$0xff]  ;;  %v115_v30 = vld [vmem:[%s2893_s1 + $0x238] sm:$0xff]  ;;  %v132_v31 = vld [vmem:[%s2893_s1 + $0x2c0] sm:$0xff] }
  0x21   :  { %630 = vmatpush.msra.mxu3 %v93_v59  ;;  %611 = vmatpush.msra.mxu2 %v76_v61  ;;  %v147_v32 = vld [vmem:[%s2893_s1 + $0x338] sm:$0xff]  ;;  %v164_v33 = vld [vmem:[%s2893_s1 + $0x3c0] sm:$0xff]  ;;  %v114_v34 = vld [vmem:[%s2893_s1 + $0x230] sm:$0xff] }
  0x22   :  { %636 = vmatpush.msrb.mxu0 %v123_v62  ;;  %591 = vmatpush.msra.mxu1 %v60_v0  ;;  %v131_v35 = vld [vmem:[%s2893_s1 + $0x2b8] sm:$0xff]  ;;  %v146_v36 = vld [vmem:[%s2893_s1 + $0x330] sm:$0xff]  ;;  %v113_v38 = vld [vmem:[%s2893_s1 + $0x228] sm:$0xff] }
  0x23   :  { %676 = vmatpush.msrb.mxu2 %v155_v63  ;;  %631 = vmatpush.msra.mxu3 %v92_v1  ;;  %v163_v37 = vld [vmem:[%s2893_s1 + $0x3b8] sm:$0xff]  ;;  %v130_v39 = vld [vmem:[%s2893_s1 + $0x2b0] sm:$0xff]  ;;  %v145_v40 = vld [vmem:[%s2893_s1 + $0x328] sm:$0xff] }
  0x24   :  { %637 = vmatpush.msrb.mxu0 %v122_v2  ;;  %656 = vmatpush.msrb.mxu1 %v139_v3  ;;  %v162_v41 = vld [vmem:[%s2893_s1 + $0x3b0] sm:$0xff]  ;;  %v112_v42 = vld [vmem:[%s2893_s1 + $0x220] sm:$0xff]  ;;  %v129_v43 = vld [vmem:[%s2893_s1 + $0x2a8] sm:$0xff] }
  0x25   :  { %677 = vmatpush.msrb.mxu2 %v154_v4  ;;  %696 = vmatpush.msrb.mxu3 %v171_v5  ;;  %v144_v44 = vld [vmem:[%s2893_s1 + $0x320] sm:$0xff]  ;;  %v161_v45 = vld [vmem:[%s2893_s1 + $0x3a8] sm:$0xff]  ;;  %v111_v46 = vld [vmem:[%s2893_s1 + $0x218] sm:$0xff] }
  0x26   :  { %638 = vmatpush.msrb.mxu0 %v121_v6  ;;  %657 = vmatpush.msrb.mxu1 %v138_v7  ;;  %v128_v47 = vld [vmem:[%s2893_s1 + $0x2a0] sm:$0xff]  ;;  %v143_v48 = vld [vmem:[%s2893_s1 + $0x318] sm:$0xff]  ;;  %v110_v50 = vld [vmem:[%s2893_s1 + $0x210] sm:$0xff] }
  0x27   :  { %678 = vmatpush.msrb.mxu2 %v153_v8  ;;  %697 = vmatpush.msrb.mxu3 %v170_v9  ;;  %v160_v49 = vld [vmem:[%s2893_s1 + $0x3a0] sm:$0xff]  ;;  %v127_v51 = vld [vmem:[%s2893_s1 + $0x298] sm:$0xff]  ;;  %v142_v52 = vld [vmem:[%s2893_s1 + $0x310] sm:$0xff] }
  0x28   :  { %639 = vmatpush.msrb.mxu0 %v120_v10  ;;  %658 = vmatpush.msrb.mxu1 %v137_v11  ;;  %v159_v53 = vld [vmem:[%s2893_s1 + $0x398] sm:$0xff]  ;;  %v109_v54 = vld [vmem:[%s2893_s1 + $0x208] sm:$0xff]  ;;  %v126_v55 = vld [vmem:[%s2893_s1 + $0x290] sm:$0xff] }
  0x29   :  { %679 = vmatpush.msrb.mxu2 %v152_v12  ;;  %698 = vmatpush.msrb.mxu3 %v169_v13  ;;  %v141_v56 = vld [vmem:[%s2893_s1 + $0x308] sm:$0xff]  ;;  %v158_v57 = vld [vmem:[%s2893_s1 + $0x390] sm:$0xff]  ;;  %v108_v59 = vld [vmem:[%s2893_s1 + $0x200] sm:$0xff] }
  0x2a   :  { %640 = vmatpush.msrb.mxu0 %v119_v14  ;;  %659 = vmatpush.msrb.mxu1 %v136_v15  ;;  %v14_v58 = vld [vmem:[%s2892_s0 + $0x10] sm:$0xff]  ;;  %v125_v60 = vld [vmem:[%s2893_s1 + $0x288] sm:$0xff]  ;;  %v140_v61 = vld [vmem:[%s2893_s1 + $0x300] sm:$0xff] }
  0x2b   :  { %680 = vmatpush.msrb.mxu2 %v151_v16  ;;  %699 = vmatpush.msrb.mxu3 %v168_v17  ;;  %v157_v62 = vld [vmem:[%s2893_s1 + $0x388] sm:$0xff]  ;;  %v12_v63 = vld [vmem:[%s2892_s0] sm:$0xff]  ;;  %v15_v0 = vld [vmem:[%s2892_s0 + $0x18] sm:$0xff] }
  0x2c   :  { %641 = vmatpush.msrb.mxu0 %v118_v18  ;;  %660 = vmatpush.msrb.mxu1 %v135_v19  ;;  %v187_v1 = vld [vmem:[%s2893_s1 + $0x478] sm:$0xff]  ;;  %v124_v3 = vld [vmem:[%s2893_s1 + $0x280] sm:$0xff] }
  0x2d   :  { %681 = vmatpush.msrb.mxu2 %v150_v20  ;;  %700 = vmatpush.msrb.mxu3 %v167_v21  ;;  %v219_v2 = vld [vmem:[%s2893_s1 + $0x578] sm:$0xff] }
  0x2e   :  { %642 = vmatpush.msrb.mxu0 %v117_v22  ;;  %661 = vmatpush.msrb.mxu1 %v134_v23 }
  0x2f   :  { %682 = vmatpush.msrb.mxu2 %v149_v24  ;;  %701 = vmatpush.msrb.mxu3 %v166_v25 }
  0x30   :  { %643 = vmatpush.msrb.mxu0 %v116_v26  ;;  %662 = vmatpush.msrb.mxu1 %v133_v27 }
  0x31   :  { %683 = vmatpush.msrb.mxu2 %v148_v28  ;;  %702 = vmatpush.msrb.mxu3 %v165_v29 }
  0x32   :  { %644 = vmatpush.msrb.mxu0 %v115_v30  ;;  %663 = vmatpush.msrb.mxu1 %v132_v31 }
  0x33   :  { %684 = vmatpush.msrb.mxu2 %v147_v32  ;;  %703 = vmatpush.msrb.mxu3 %v164_v33 }
  0x34   :  { %645 = vmatpush.msrb.mxu0 %v114_v34  ;;  %664 = vmatpush.msrb.mxu1 %v131_v35 }
  0x35   :  { %685 = vmatpush.msrb.mxu2 %v146_v36  ;;  %704 = vmatpush.msrb.mxu3 %v163_v37 }
  0x36   :  { %646 = vmatpush.msrb.mxu0 %v113_v38  ;;  %665 = vmatpush.msrb.mxu1 %v130_v39 }
  0x37   :  { %686 = vmatpush.msrb.mxu2 %v145_v40  ;;  %705 = vmatpush.msrb.mxu3 %v162_v41 }
  0x38   :  { %647 = vmatpush.msrb.mxu0 %v112_v42  ;;  %666 = vmatpush.msrb.mxu1 %v129_v43 }
  0x39   :  { %687 = vmatpush.msrb.mxu2 %v144_v44  ;;  %706 = vmatpush.msrb.mxu3 %v161_v45 }
  0x3a   :  { %648 = vmatpush.msrb.mxu0 %v111_v46  ;;  %667 = vmatpush.msrb.mxu1 %v128_v47 }
  0x3b   :  { %688 = vmatpush.msrb.mxu2 %v143_v48  ;;  %707 = vmatpush.msrb.mxu3 %v160_v49 }
  0x3c   :  { %649 = vmatpush.msrb.mxu0 %v110_v50  ;;  %668 = vmatpush.msrb.mxu1 %v127_v51 }
  0x3d   :  { %689 = vmatpush.msrb.mxu2 %v142_v52  ;;  %708 = vmatpush.msrb.mxu3 %v159_v53 }
  0x3e   :  { %650 = vmatpush.msrb.mxu0 %v109_v54  ;;  %669 = vmatpush.msrb.mxu1 %v126_v55 }
  0x3f   :  { %690 = vmatpush.msrb.mxu2 %v141_v56  ;;  %709 = vmatpush.msrb.mxu3 %v158_v57 }
  0x40   :  { %612 = vmatmul.f32.vlgmr.msra.gmra.mxu2 %v14_v58  ;;  %651 = vmatpush.msrb.mxu0 %v108_v59 }
  0x41   :  { %670 = vmatpush.msrb.mxu1 %v125_v60  ;;  %691 = vmatpush.msrb.mxu2 %v140_v61 }
  0x42   :  { %7 = vsyncpa [#allocation3], 0  ;;  %710 = vmatpush.msrb.mxu3 %v157_v62  ;;  %572 = vmatmul.f32.vlgmr.msra.gmra.mxu0 %v12_v63  ;;  %v156_v4 = vld [vmem:[%s2893_s1 + $0x380] sm:$0xff]  ;;  %v13_v5 = vld [vmem:[%s2892_s0 + $0x8] sm:$0xff]  ;;  %s1205_s7 = sshll.u32 %s2894_s2, 4  ;;  %vm1196_vm0 = vcmask 695296   ;;  %s1206_s7 = int_to_ptr.hbm [resolvable:$true] %s1205_s7 }
  0x43   :  { %632 = vmatmul.f32.vlgmr.msra.gmra.mxu3 %v15_v0  ;;  %716 = vmatpush.msra.mxu0 %v187_v1  ;;  %v186_v6 = vld [vmem:[%s2893_s1 + $0x470] sm:$0xff]  ;;  %v203_v7 = vld [vmem:[%s2893_s1 + $0x4f8] sm:$0xff]  ;;  %v185_v10 = vld [vmem:[%s2893_s1 + $0x468] sm:$0xff] }
  0x44   :  { %756 = vmatpush.msra.mxu2 %v219_v2  ;;  %671 = vmatpush.msrb.mxu1 %v124_v3  ;;  %v218_v8 = vld [vmem:[%s2893_s1 + $0x570] sm:$0xff]  ;;  %v235_v9 = vld [vmem:[%s2893_s1 + $0x5f8] sm:$0xff]  ;;  %v217_v12 = vld [vmem:[%s2893_s1 + $0x568] sm:$0xff] }
  0x45   :  { %711 = vmatpush.msrb.mxu3 %v156_v4  ;;  %592 = vmatmul.f32.vlgmr.msra.gmra.mxu1 %v13_v5  ;;  %v202_v11 = vld [vmem:[%s2893_s1 + $0x4f0] sm:$0xff]  ;;  %v184_v15 = vld [vmem:[%s2893_s1 + $0x460] sm:$0xff]  ;;  %v201_v16 = vld [vmem:[%s2893_s1 + $0x4e8] sm:$0xff] }
  0x46   :  { %717 = vmatpush.msra.mxu0 %v186_v6  ;;  %736 = vmatpush.msra.mxu1 %v203_v7  ;;  %v234_v13 = vld [vmem:[%s2893_s1 + $0x5f0] sm:$0xff]  ;;  %v216_v17 = vld [vmem:[%s2893_s1 + $0x560] sm:$0xff]  ;;  %v233_v18 = vld [vmem:[%s2893_s1 + $0x5e8] sm:$0xff] }
  0x47   :  { %757 = vmatpush.msra.mxu2 %v218_v8  ;;  %776 = vmatpush.msra.mxu3 %v235_v9  ;;  %v18_v14 = vld [vmem:[%s2892_s0 + $0x30] sm:$0xff]  ;;  %v16_v19 = vld [vmem:[%s2892_s0 + $0x20] sm:$0xff]  ;;  %v19_v20 = vld [vmem:[%s2892_s0 + $0x38] sm:$0xff] }
  0x48   :  { %718 = vmatpush.msra.mxu0 %v185_v10  ;;  %737 = vmatpush.msra.mxu1 %v202_v11  ;;  %v183_v21 = vld [vmem:[%s2893_s1 + $0x458] sm:$0xff]  ;;  %v200_v22 = vld [vmem:[%s2893_s1 + $0x4e0] sm:$0xff]  ;;  %v17_v25 = vld [vmem:[%s2892_s0 + $0x28] sm:$0xff] }
  0x49   :  { %758 = vmatpush.msra.mxu2 %v217_v12  ;;  %777 = vmatpush.msra.mxu3 %v234_v13  ;;  %v215_v23 = vld [vmem:[%s2893_s1 + $0x558] sm:$0xff]  ;;  %v232_v24 = vld [vmem:[%s2893_s1 + $0x5e0] sm:$0xff]  ;;  %v182_v26 = vld [vmem:[%s2893_s1 + $0x450] sm:$0xff] }
  0x4a   :  { %692 = vmatmul.f32.vlgmr.msrb.gmra.mxu2 %v18_v14  ;;  %719 = vmatpush.msra.mxu0 %v184_v15  ;;  %v199_v27 = vld [vmem:[%s2893_s1 + $0x4d8] sm:$0xff]  ;;  %v214_v28 = vld [vmem:[%s2893_s1 + $0x550] sm:$0xff]  ;;  %v181_v30 = vld [vmem:[%s2893_s1 + $0x448] sm:$0xff] }
  0x4b   :  { %738 = vmatpush.msra.mxu1 %v201_v16  ;;  %759 = vmatpush.msra.mxu2 %v216_v17  ;;  %v231_v29 = vld [vmem:[%s2893_s1 + $0x5d8] sm:$0xff]  ;;  %v198_v31 = vld [vmem:[%s2893_s1 + $0x4d0] sm:$0xff]  ;;  %v213_v32 = vld [vmem:[%s2893_s1 + $0x548] sm:$0xff] }
  0x4c   :  { %778 = vmatpush.msra.mxu3 %v233_v18  ;;  %652 = vmatmul.f32.vlgmr.msrb.gmra.mxu0 %v16_v19  ;;  %v230_v33 = vld [vmem:[%s2893_s1 + $0x5d0] sm:$0xff]  ;;  %v180_v34 = vld [vmem:[%s2893_s1 + $0x440] sm:$0xff]  ;;  %v197_v35 = vld [vmem:[%s2893_s1 + $0x4c8] sm:$0xff] }
  0x4d   :  { %712 = vmatmul.f32.vlgmr.msrb.gmra.mxu3 %v19_v20  ;;  %720 = vmatpush.msra.mxu0 %v183_v21  ;;  %v212_v36 = vld [vmem:[%s2893_s1 + $0x540] sm:$0xff]  ;;  %v229_v37 = vld [vmem:[%s2893_s1 + $0x5c8] sm:$0xff]  ;;  %v179_v38 = vld [vmem:[%s2893_s1 + $0x438] sm:$0xff] }
  0x4e   :  { %739 = vmatpush.msra.mxu1 %v200_v22  ;;  %760 = vmatpush.msra.mxu2 %v215_v23  ;;  %v196_v39 = vld [vmem:[%s2893_s1 + $0x4c0] sm:$0xff]  ;;  %v211_v40 = vld [vmem:[%s2893_s1 + $0x538] sm:$0xff]  ;;  %v178_v42 = vld [vmem:[%s2893_s1 + $0x430] sm:$0xff] }
  0x4f   :  { %779 = vmatpush.msra.mxu3 %v232_v24  ;;  %672 = vmatmul.f32.vlgmr.msrb.gmra.mxu1 %v17_v25  ;;  %v228_v41 = vld [vmem:[%s2893_s1 + $0x5c0] sm:$0xff]  ;;  %v195_v43 = vld [vmem:[%s2893_s1 + $0x4b8] sm:$0xff]  ;;  %v210_v44 = vld [vmem:[%s2893_s1 + $0x530] sm:$0xff] }
  0x50   :  { %721 = vmatpush.msra.mxu0 %v182_v26  ;;  %740 = vmatpush.msra.mxu1 %v199_v27  ;;  %v227_v45 = vld [vmem:[%s2893_s1 + $0x5b8] sm:$0xff]  ;;  %v177_v46 = vld [vmem:[%s2893_s1 + $0x428] sm:$0xff]  ;;  %v194_v47 = vld [vmem:[%s2893_s1 + $0x4b0] sm:$0xff] }
  0x51   :  { %761 = vmatpush.msra.mxu2 %v214_v28  ;;  %780 = vmatpush.msra.mxu3 %v231_v29  ;;  %v209_v48 = vld [vmem:[%s2893_s1 + $0x528] sm:$0xff]  ;;  %v226_v49 = vld [vmem:[%s2893_s1 + $0x5b0] sm:$0xff]  ;;  %v176_v50 = vld [vmem:[%s2893_s1 + $0x420] sm:$0xff] }
  0x52   :  { %722 = vmatpush.msra.mxu0 %v181_v30  ;;  %741 = vmatpush.msra.mxu1 %v198_v31  ;;  %v193_v51 = vld [vmem:[%s2893_s1 + $0x4a8] sm:$0xff]  ;;  %v208_v52 = vld [vmem:[%s2893_s1 + $0x520] sm:$0xff]  ;;  %v175_v54 = vld [vmem:[%s2893_s1 + $0x418] sm:$0xff] }
  0x53   :  { %762 = vmatpush.msra.mxu2 %v213_v32  ;;  %781 = vmatpush.msra.mxu3 %v230_v33  ;;  %v225_v53 = vld [vmem:[%s2893_s1 + $0x5a8] sm:$0xff]  ;;  %v192_v55 = vld [vmem:[%s2893_s1 + $0x4a0] sm:$0xff]  ;;  %v207_v56 = vld [vmem:[%s2893_s1 + $0x518] sm:$0xff] }
  0x54   :  { %723 = vmatpush.msra.mxu0 %v180_v34  ;;  %742 = vmatpush.msra.mxu1 %v197_v35  ;;  %v224_v57 = vld [vmem:[%s2893_s1 + $0x5a0] sm:$0xff]  ;;  %v174_v58 = vld [vmem:[%s2893_s1 + $0x410] sm:$0xff]  ;;  %v191_v59 = vld [vmem:[%s2893_s1 + $0x498] sm:$0xff] }
  0x55   :  { %763 = vmatpush.msra.mxu2 %v212_v36  ;;  %782 = vmatpush.msra.mxu3 %v229_v37  ;;  %v206_v60 = vld [vmem:[%s2893_s1 + $0x510] sm:$0xff]  ;;  %v223_v61 = vld [vmem:[%s2893_s1 + $0x598] sm:$0xff]  ;;  %v173_v62 = vld [vmem:[%s2893_s1 + $0x408] sm:$0xff] }
  0x56   :  { %724 = vmatpush.msra.mxu0 %v179_v38  ;;  %743 = vmatpush.msra.mxu1 %v196_v39  ;;  %v190_v63 = vld [vmem:[%s2893_s1 + $0x490] sm:$0xff]  ;;  %v205_v0 = vld [vmem:[%s2893_s1 + $0x508] sm:$0xff]  ;;  %v172_v2 = vld [vmem:[%s2893_s1 + $0x400] sm:$0xff] }
  0x57   :  { %764 = vmatpush.msra.mxu2 %v211_v40  ;;  %783 = vmatpush.msra.mxu3 %v228_v41  ;;  %v222_v1 = vld [vmem:[%s2893_s1 + $0x590] sm:$0xff]  ;;  %v189_v3 = vld [vmem:[%s2893_s1 + $0x488] sm:$0xff]  ;;  %v204_v4 = vld [vmem:[%s2893_s1 + $0x500] sm:$0xff] }
  0x58   :  { %725 = vmatpush.msra.mxu0 %v178_v42  ;;  %744 = vmatpush.msra.mxu1 %v195_v43  ;;  %v221_v5 = vld [vmem:[%s2893_s1 + $0x588] sm:$0xff]  ;;  %v20_v6 = vld [vmem:[%s2892_s0 + $0x40] sm:$0xff]  ;;  %v22_v7 = vld [vmem:[%s2892_s0 + $0x50] sm:$0xff] }
  0x59   :  { %765 = vmatpush.msra.mxu2 %v210_v44  ;;  %784 = vmatpush.msra.mxu3 %v227_v45  ;;  %v251_v8 = vld [vmem:[%s2893_s1 + $0x678] sm:$0xff]  ;;  %v188_v10 = vld [vmem:[%s2893_s1 + $0x480] sm:$0xff]  ;;  %v21_v12 = vld [vmem:[%s2892_s0 + $0x48] sm:$0xff] }
  0x5a   :  { %726 = vmatpush.msra.mxu0 %v177_v46  ;;  %745 = vmatpush.msra.mxu1 %v194_v47  ;;  %v283_v9 = vld [vmem:[%s2893_s1 + $0x778] sm:$0xff]  ;;  %v220_v11 = vld [vmem:[%s2893_s1 + $0x580] sm:$0xff]  ;;  %v250_v14 = vld [vmem:[%s2893_s1 + $0x670] sm:$0xff] }
  0x5b   :  { %766 = vmatpush.msra.mxu2 %v209_v48  ;;  %785 = vmatpush.msra.mxu3 %v226_v49  ;;  %v23_v13 = vld [vmem:[%s2892_s0 + $0x58] sm:$0xff]  ;;  %v282_v16 = vld [vmem:[%s2893_s1 + $0x770] sm:$0xff]  ;;  %v249_v18 = vld [vmem:[%s2893_s1 + $0x668] sm:$0xff] }
  0x5c   :  { %727 = vmatpush.msra.mxu0 %v176_v50  ;;  %746 = vmatpush.msra.mxu1 %v193_v51  ;;  %v267_v15 = vld [vmem:[%s2893_s1 + $0x6f8] sm:$0xff]  ;;  %v266_v19 = vld [vmem:[%s2893_s1 + $0x6f0] sm:$0xff]  ;;  %v281_v20 = vld [vmem:[%s2893_s1 + $0x768] sm:$0xff] }
  0x5d   :  { %767 = vmatpush.msra.mxu2 %v208_v52  ;;  %786 = vmatpush.msra.mxu3 %v225_v53  ;;  %v299_v17 = vld [vmem:[%s2893_s1 + $0x7f8] sm:$0xff]  ;;  %v298_v21 = vld [vmem:[%s2893_s1 + $0x7f0] sm:$0xff]  ;;  %v248_v22 = vld [vmem:[%s2893_s1 + $0x660] sm:$0xff] }
  0x5e   :  { %728 = vmatpush.msra.mxu0 %v175_v54  ;;  %747 = vmatpush.msra.mxu1 %v192_v55  ;;  %v265_v23 = vld [vmem:[%s2893_s1 + $0x6e8] sm:$0xff]  ;;  %v280_v24 = vld [vmem:[%s2893_s1 + $0x760] sm:$0xff]  ;;  %v247_v26 = vld [vmem:[%s2893_s1 + $0x658] sm:$0xff] }
  0x5f   :  { %768 = vmatpush.msra.mxu2 %v207_v56  ;;  %787 = vmatpush.msra.mxu3 %v224_v57  ;;  %v297_v25 = vld [vmem:[%s2893_s1 + $0x7e8] sm:$0xff]  ;;  %v264_v27 = vld [vmem:[%s2893_s1 + $0x6e0] sm:$0xff]  ;;  %v279_v28 = vld [vmem:[%s2893_s1 + $0x758] sm:$0xff] }
  0x60   :  { %729 = vmatpush.msra.mxu0 %v174_v58  ;;  %748 = vmatpush.msra.mxu1 %v191_v59  ;;  %v296_v29 = vld [vmem:[%s2893_s1 + $0x7e0] sm:$0xff]  ;;  %v246_v30 = vld [vmem:[%s2893_s1 + $0x650] sm:$0xff]  ;;  %v263_v31 = vld [vmem:[%s2893_s1 + $0x6d8] sm:$0xff] }
  0x61   :  { %769 = vmatpush.msra.mxu2 %v206_v60  ;;  %788 = vmatpush.msra.mxu3 %v223_v61  ;;  %v278_v32 = vld [vmem:[%s2893_s1 + $0x750] sm:$0xff]  ;;  %v295_v33 = vld [vmem:[%s2893_s1 + $0x7d8] sm:$0xff]  ;;  %v245_v34 = vld [vmem:[%s2893_s1 + $0x648] sm:$0xff] }
  0x62   :  { %730 = vmatpush.msra.mxu0 %v173_v62  ;;  %749 = vmatpush.msra.mxu1 %v190_v63  ;;  %v262_v35 = vld [vmem:[%s2893_s1 + $0x6d0] sm:$0xff]  ;;  %v277_v36 = vld [vmem:[%s2893_s1 + $0x748] sm:$0xff]  ;;  %v244_v38 = vld [vmem:[%s2893_s1 + $0x640] sm:$0xff] }
  0x63   :  { %770 = vmatpush.msra.mxu2 %v205_v0  ;;  %789 = vmatpush.msra.mxu3 %v222_v1  ;;  %v294_v37 = vld [vmem:[%s2893_s1 + $0x7d0] sm:$0xff]  ;;  %v261_v39 = vld [vmem:[%s2893_s1 + $0x6c8] sm:$0xff]  ;;  %v276_v40 = vld [vmem:[%s2893_s1 + $0x740] sm:$0xff] }
  0x64   :  { %731 = vmatpush.msra.mxu0 %v172_v2  ;;  %750 = vmatpush.msra.mxu1 %v189_v3  ;;  %v293_v41 = vld [vmem:[%s2893_s1 + $0x7c8] sm:$0xff]  ;;  %v243_v42 = vld [vmem:[%s2893_s1 + $0x638] sm:$0xff]  ;;  %v260_v43 = vld [vmem:[%s2893_s1 + $0x6c0] sm:$0xff] }
  0x65   :  { %771 = vmatpush.msra.mxu2 %v204_v4  ;;  %790 = vmatpush.msra.mxu3 %v221_v5  ;;  %v275_v44 = vld [vmem:[%s2893_s1 + $0x738] sm:$0xff]  ;;  %v292_v45 = vld [vmem:[%s2893_s1 + $0x7c0] sm:$0xff]  ;;  %v242_v46 = vld [vmem:[%s2893_s1 + $0x630] sm:$0xff] }
  0x66   :  { %732 = vmatmul.f32.vlgmr.msra.gmra.mxu0 %v20_v6  ;;  %772 = vmatmul.f32.vlgmr.msra.gmra.mxu2 %v22_v7  ;;  %v259_v47 = vld [vmem:[%s2893_s1 + $0x6b8] sm:$0xff]  ;;  %v274_v48 = vld [vmem:[%s2893_s1 + $0x730] sm:$0xff]  ;;  %v241_v50 = vld [vmem:[%s2893_s1 + $0x628] sm:$0xff] }
  0x67   :  { %796 = vmatpush.msrb.mxu0 %v251_v8  ;;  %836 = vmatpush.msrb.mxu2 %v283_v9  ;;  %v291_v49 = vld [vmem:[%s2893_s1 + $0x7b8] sm:$0xff]  ;;  %v258_v51 = vld [vmem:[%s2893_s1 + $0x6b0] sm:$0xff]  ;;  %v273_v52 = vld [vmem:[%s2893_s1 + $0x728] sm:$0xff] }
  0x68   :  { %751 = vmatpush.msra.mxu1 %v188_v10  ;;  %791 = vmatpush.msra.mxu3 %v220_v11  ;;  %v290_v53 = vld [vmem:[%s2893_s1 + $0x7b0] sm:$0xff]  ;;  %v240_v54 = vld [vmem:[%s2893_s1 + $0x620] sm:$0xff]  ;;  %v257_v55 = vld [vmem:[%s2893_s1 + $0x6a8] sm:$0xff] }
  0x69   :  { %752 = vmatmul.f32.vlgmr.msra.gmra.mxu1 %v21_v12  ;;  %792 = vmatmul.f32.vlgmr.msra.gmra.mxu3 %v23_v13  ;;  %v272_v56 = vld [vmem:[%s2893_s1 + $0x720] sm:$0xff]  ;;  %v289_v57 = vld [vmem:[%s2893_s1 + $0x7a8] sm:$0xff]  ;;  %v239_v58 = vld [vmem:[%s2893_s1 + $0x618] sm:$0xff] }
  0x6a   :  { %797 = vmatpush.msrb.mxu0 %v250_v14  ;;  %816 = vmatpush.msrb.mxu1 %v267_v15  ;;  %v256_v59 = vld [vmem:[%s2893_s1 + $0x6a0] sm:$0xff]  ;;  %v271_v60 = vld [vmem:[%s2893_s1 + $0x718] sm:$0xff]  ;;  %v238_v62 = vld [vmem:[%s2893_s1 + $0x610] sm:$0xff] }
  0x6b   :  { %837 = vmatpush.msrb.mxu2 %v282_v16  ;;  %856 = vmatpush.msrb.mxu3 %v299_v17  ;;  %v288_v61 = vld [vmem:[%s2893_s1 + $0x7a0] sm:$0xff]  ;;  %v255_v63 = vld [vmem:[%s2893_s1 + $0x698] sm:$0xff]  ;;  %v270_v0 = vld [vmem:[%s2893_s1 + $0x710] sm:$0xff] }
  0x6c   :  { %798 = vmatpush.msrb.mxu0 %v249_v18  ;;  %817 = vmatpush.msrb.mxu1 %v266_v19  ;;  %v287_v1 = vld [vmem:[%s2893_s1 + $0x798] sm:$0xff]  ;;  %v237_v2 = vld [vmem:[%s2893_s1 + $0x608] sm:$0xff]  ;;  %v254_v3 = vld [vmem:[%s2893_s1 + $0x690] sm:$0xff] }
  0x6d   :  { %838 = vmatpush.msrb.mxu2 %v281_v20  ;;  %857 = vmatpush.msrb.mxu3 %v298_v21  ;;  %v269_v4 = vld [vmem:[%s2893_s1 + $0x708] sm:$0xff]  ;;  %v286_v5 = vld [vmem:[%s2893_s1 + $0x790] sm:$0xff]  ;;  %v236_v6 = vld [vmem:[%s2893_s1 + $0x600] sm:$0xff] }
  0x6e   :  { %799 = vmatpush.msrb.mxu0 %v248_v22  ;;  %818 = vmatpush.msrb.mxu1 %v265_v23  ;;  %v253_v7 = vld [vmem:[%s2893_s1 + $0x688] sm:$0xff]  ;;  %v268_v8 = vld [vmem:[%s2893_s1 + $0x700] sm:$0xff]  ;;  %v26_v11 = vld [vmem:[%s2892_s0 + $0x70] sm:$0xff] }
  0x6f   :  { %839 = vmatpush.msrb.mxu2 %v280_v24  ;;  %858 = vmatpush.msrb.mxu3 %v297_v25  ;;  %v285_v9 = vld [vmem:[%s2893_s1 + $0x788] sm:$0xff]  ;;  %v24_v10 = vld [vmem:[%s2892_s0 + $0x60] sm:$0xff]  ;;  %v315_v12 = vld [vmem:[%s2893_s1 + $0x878] sm:$0xff] }
  0x70   :  { %800 = vmatpush.msrb.mxu0 %v247_v26  ;;  %819 = vmatpush.msrb.mxu1 %v264_v27  ;;  %v347_v13 = vld [vmem:[%s2893_s1 + $0x978] sm:$0xff]  ;;  %v252_v14 = vld [vmem:[%s2893_s1 + $0x680] sm:$0xff]  ;;  %v25_v16 = vld [vmem:[%s2892_s0 + $0x68] sm:$0xff] }
  0x71   :  { %840 = vmatpush.msrb.mxu2 %v279_v28  ;;  %859 = vmatpush.msrb.mxu3 %v296_v29  ;;  %v284_v15 = vld [vmem:[%s2893_s1 + $0x780] sm:$0xff]  ;;  %v27_v17 = vld [vmem:[%s2892_s0 + $0x78] sm:$0xff]  ;;  %v314_v18 = vld [vmem:[%s2893_s1 + $0x870] sm:$0xff] }
  0x72   :  { %801 = vmatpush.msrb.mxu0 %v246_v30  ;;  %820 = vmatpush.msrb.mxu1 %v263_v31  ;;  %v331_v19 = vld [vmem:[%s2893_s1 + $0x8f8] sm:$0xff]  ;;  %v346_v20 = vld [vmem:[%s2893_s1 + $0x970] sm:$0xff]  ;;  %v313_v22 = vld [vmem:[%s2893_s1 + $0x868] sm:$0xff] }
  0x73   :  { %841 = vmatpush.msrb.mxu2 %v278_v32  ;;  %860 = vmatpush.msrb.mxu3 %v295_v33  ;;  %v363_v21 = vld [vmem:[%s2893_s1 + $0x9f8] sm:$0xff]  ;;  %v330_v23 = vld [vmem:[%s2893_s1 + $0x8f0] sm:$0xff]  ;;  %v345_v24 = vld [vmem:[%s2893_s1 + $0x968] sm:$0xff] }
  0x74   :  { %802 = vmatpush.msrb.mxu0 %v245_v34  ;;  %821 = vmatpush.msrb.mxu1 %v262_v35  ;;  %v362_v25 = vld [vmem:[%s2893_s1 + $0x9f0] sm:$0xff]  ;;  %v312_v26 = vld [vmem:[%s2893_s1 + $0x860] sm:$0xff]  ;;  %v329_v27 = vld [vmem:[%s2893_s1 + $0x8e8] sm:$0xff] }
  0x75   :  { %842 = vmatpush.msrb.mxu2 %v277_v36  ;;  %861 = vmatpush.msrb.mxu3 %v294_v37  ;;  %v344_v28 = vld [vmem:[%s2893_s1 + $0x960] sm:$0xff]  ;;  %v361_v29 = vld [vmem:[%s2893_s1 + $0x9e8] sm:$0xff]  ;;  %v311_v30 = vld [vmem:[%s2893_s1 + $0x858] sm:$0xff] }
  0x76   :  { %803 = vmatpush.msrb.mxu0 %v244_v38  ;;  %822 = vmatpush.msrb.mxu1 %v261_v39  ;;  %v328_v31 = vld [vmem:[%s2893_s1 + $0x8e0] sm:$0xff]  ;;  %v343_v32 = vld [vmem:[%s2893_s1 + $0x958] sm:$0xff]  ;;  %v310_v34 = vld [vmem:[%s2893_s1 + $0x850] sm:$0xff] }
  0x77   :  { %843 = vmatpush.msrb.mxu2 %v276_v40  ;;  %862 = vmatpush.msrb.mxu3 %v293_v41  ;;  %v360_v33 = vld [vmem:[%s2893_s1 + $0x9e0] sm:$0xff]  ;;  %v327_v35 = vld [vmem:[%s2893_s1 + $0x8d8] sm:$0xff]  ;;  %v342_v36 = vld [vmem:[%s2893_s1 + $0x950] sm:$0xff] }
  0x78   :  { %804 = vmatpush.msrb.mxu0 %v243_v42  ;;  %823 = vmatpush.msrb.mxu1 %v260_v43  ;;  %v359_v37 = vld [vmem:[%s2893_s1 + $0x9d8] sm:$0xff]  ;;  %v309_v38 = vld [vmem:[%s2893_s1 + $0x848] sm:$0xff]  ;;  %v326_v39 = vld [vmem:[%s2893_s1 + $0x8d0] sm:$0xff] }
  0x79   :  { %844 = vmatpush.msrb.mxu2 %v275_v44  ;;  %863 = vmatpush.msrb.mxu3 %v292_v45  ;;  %v341_v40 = vld [vmem:[%s2893_s1 + $0x948] sm:$0xff]  ;;  %v358_v41 = vld [vmem:[%s2893_s1 + $0x9d0] sm:$0xff]  ;;  %v308_v42 = vld [vmem:[%s2893_s1 + $0x840] sm:$0xff] }
  0x7a   :  { %805 = vmatpush.msrb.mxu0 %v242_v46  ;;  %824 = vmatpush.msrb.mxu1 %v259_v47  ;;  %v325_v43 = vld [vmem:[%s2893_s1 + $0x8c8] sm:$0xff]  ;;  %v340_v44 = vld [vmem:[%s2893_s1 + $0x940] sm:$0xff]  ;;  %v307_v46 = vld [vmem:[%s2893_s1 + $0x838] sm:$0xff] }
  0x7b   :  { %845 = vmatpush.msrb.mxu2 %v274_v48  ;;  %864 = vmatpush.msrb.mxu3 %v291_v49  ;;  %v357_v45 = vld [vmem:[%s2893_s1 + $0x9c8] sm:$0xff]  ;;  %v324_v47 = vld [vmem:[%s2893_s1 + $0x8c0] sm:$0xff]  ;;  %v339_v48 = vld [vmem:[%s2893_s1 + $0x938] sm:$0xff] }
  0x7c   :  { %806 = vmatpush.msrb.mxu0 %v241_v50  ;;  %825 = vmatpush.msrb.mxu1 %v258_v51  ;;  %v356_v49 = vld [vmem:[%s2893_s1 + $0x9c0] sm:$0xff]  ;;  %v306_v50 = vld [vmem:[%s2893_s1 + $0x830] sm:$0xff]  ;;  %v323_v51 = vld [vmem:[%s2893_s1 + $0x8b8] sm:$0xff] }
  0x7d   :  { %846 = vmatpush.msrb.mxu2 %v273_v52  ;;  %865 = vmatpush.msrb.mxu3 %v290_v53  ;;  %v338_v52 = vld [vmem:[%s2893_s1 + $0x930] sm:$0xff]  ;;  %v355_v53 = vld [vmem:[%s2893_s1 + $0x9b8] sm:$0xff] }
  0x7e   :  { %807 = vmatpush.msrb.mxu0 %v240_v54  ;;  %826 = vmatpush.msrb.mxu1 %v257_v55  ;;  %v305_v54 = vld [vmem:[%s2893_s1 + $0x828] sm:$0xff]  ;;  %v322_v55 = vld [vmem:[%s2893_s1 + $0x8b0] sm:$0xff] }
  0x7f   :  { %847 = vmatpush.msrb.mxu2 %v272_v56  ;;  %866 = vmatpush.msrb.mxu3 %v289_v57  ;;  %v337_v56 = vld [vmem:[%s2893_s1 + $0x928] sm:$0xff]  ;;  %v354_v57 = vld [vmem:[%s2893_s1 + $0x9b0] sm:$0xff] }
  0x80   :  { %808 = vmatpush.msrb.mxu0 %v239_v58  ;;  %827 = vmatpush.msrb.mxu1 %v256_v59  ;;  %v304_v58 = vld [vmem:[%s2893_s1 + $0x820] sm:$0xff]  ;;  %v321_v59 = vld [vmem:[%s2893_s1 + $0x8a8] sm:$0xff] }
  0x81   :  { %848 = vmatpush.msrb.mxu2 %v271_v60  ;;  %867 = vmatpush.msrb.mxu3 %v288_v61  ;;  %v336_v60 = vld [vmem:[%s2893_s1 + $0x920] sm:$0xff]  ;;  %v353_v61 = vld [vmem:[%s2893_s1 + $0x9a8] sm:$0xff] }
  0x82   :  { %809 = vmatpush.msrb.mxu0 %v238_v62  ;;  %828 = vmatpush.msrb.mxu1 %v255_v63  ;;  %v303_v62 = vld [vmem:[%s2893_s1 + $0x818] sm:$0xff]  ;;  %v320_v63 = vld [vmem:[%s2893_s1 + $0x8a0] sm:$0xff] }
  0x83   :  { %849 = vmatpush.msrb.mxu2 %v270_v0  ;;  %868 = vmatpush.msrb.mxu3 %v287_v1  ;;  %v335_v0 = vld [vmem:[%s2893_s1 + $0x918] sm:$0xff]  ;;  %v352_v1 = vld [vmem:[%s2893_s1 + $0x9a0] sm:$0xff] }
  0x84   :  { %810 = vmatpush.msrb.mxu0 %v237_v2  ;;  %829 = vmatpush.msrb.mxu1 %v254_v3  ;;  %v302_v2 = vld [vmem:[%s2893_s1 + $0x810] sm:$0xff]  ;;  %v319_v3 = vld [vmem:[%s2893_s1 + $0x898] sm:$0xff] }
  0x85   :  { %850 = vmatpush.msrb.mxu2 %v269_v4  ;;  %869 = vmatpush.msrb.mxu3 %v286_v5  ;;  %v334_v4 = vld [vmem:[%s2893_s1 + $0x910] sm:$0xff]  ;;  %v351_v5 = vld [vmem:[%s2893_s1 + $0x998] sm:$0xff] }
  0x86   :  { %811 = vmatpush.msrb.mxu0 %v236_v6  ;;  %830 = vmatpush.msrb.mxu1 %v253_v7  ;;  %v301_v6 = vld [vmem:[%s2893_s1 + $0x808] sm:$0xff]  ;;  %v318_v7 = vld [vmem:[%s2893_s1 + $0x890] sm:$0xff] }
  0x87   :  { %851 = vmatpush.msrb.mxu2 %v268_v8  ;;  %870 = vmatpush.msrb.mxu3 %v285_v9  ;;  %v333_v8 = vld [vmem:[%s2893_s1 + $0x908] sm:$0xff]  ;;  %v350_v9 = vld [vmem:[%s2893_s1 + $0x990] sm:$0xff] }
  0x88   :  { %812 = vmatmul.f32.vlgmr.msrb.gmra.mxu0 %v24_v10  ;;  %852 = vmatmul.f32.vlgmr.msrb.gmra.mxu2 %v26_v11  ;;  %v300_v10 = vld [vmem:[%s2893_s1 + $0x800] sm:$0xff]  ;;  %v317_v11 = vld [vmem:[%s2893_s1 + $0x888] sm:$0xff] }
  0x89   :  { %876 = vmatpush.msra.mxu0 %v315_v12  ;;  %916 = vmatpush.msra.mxu2 %v347_v13  ;;  %v332_v12 = vld [vmem:[%s2893_s1 + $0x900] sm:$0xff]  ;;  %v349_v13 = vld [vmem:[%s2893_s1 + $0x988] sm:$0xff] }
  0x8a   :  { %831 = vmatpush.msrb.mxu1 %v252_v14  ;;  %871 = vmatpush.msrb.mxu3 %v284_v15  ;;  %v28_v14 = vld [vmem:[%s2892_s0 + $0x80] sm:$0xff]  ;;  %v30_v15 = vld [vmem:[%s2892_s0 + $0x90] sm:$0xff] }
  0x8b   :  { %832 = vmatmul.f32.vlgmr.msrb.gmra.mxu1 %v25_v16  ;;  %872 = vmatmul.f32.vlgmr.msrb.gmra.mxu3 %v27_v17  ;;  %v379_v16 = vld [vmem:[%s2893_s1 + $0xa78] sm:$0xff] }
  0x8c   :  { %877 = vmatpush.msra.mxu0 %v314_v18  ;;  %896 = vmatpush.msra.mxu1 %v331_v19  ;;  %v411_v17 = vld [vmem:[%s2893_s1 + $0xb78] sm:$0xff]  ;;  %v316_v18 = vld [vmem:[%s2893_s1 + $0x880] sm:$0xff] }
  0x8d   :  { %917 = vmatpush.msra.mxu2 %v346_v20  ;;  %936 = vmatpush.msra.mxu3 %v363_v21  ;;  %v348_v19 = vld [vmem:[%s2893_s1 + $0x980] sm:$0xff]  ;;  %v29_v20 = vld [vmem:[%s2892_s0 + $0x88] sm:$0xff]  ;;  %v31_v21 = vld [vmem:[%s2892_s0 + $0x98] sm:$0xff] }
  0x8e   :  { %878 = vmatpush.msra.mxu0 %v313_v22  ;;  %897 = vmatpush.msra.mxu1 %v330_v23  ;;  %v378_v22 = vld [vmem:[%s2893_s1 + $0xa70] sm:$0xff]  ;;  %v395_v23 = vld [vmem:[%s2893_s1 + $0xaf8] sm:$0xff] }
  0x8f   :  { %918 = vmatpush.msra.mxu2 %v345_v24  ;;  %937 = vmatpush.msra.mxu3 %v362_v25  ;;  %v410_v24 = vld [vmem:[%s2893_s1 + $0xb70] sm:$0xff]  ;;  %v427_v25 = vld [vmem:[%s2893_s1 + $0xbf8] sm:$0xff] }
  0x90   :  { %879 = vmatpush.msra.mxu0 %v312_v26  ;;  %898 = vmatpush.msra.mxu1 %v329_v27  ;;  %v377_v26 = vld [vmem:[%s2893_s1 + $0xa68] sm:$0xff]  ;;  %v394_v27 = vld [vmem:[%s2893_s1 + $0xaf0] sm:$0xff] }
  0x91   :  { %919 = vmatpush.msra.mxu2 %v344_v28  ;;  %938 = vmatpush.msra.mxu3 %v361_v29  ;;  %v409_v28 = vld [vmem:[%s2893_s1 + $0xb68] sm:$0xff]  ;;  %v426_v29 = vld [vmem:[%s2893_s1 + $0xbf0] sm:$0xff] }
  0x92   :  { %880 = vmatpush.msra.mxu0 %v311_v30  ;;  %899 = vmatpush.msra.mxu1 %v328_v31  ;;  %v376_v30 = vld [vmem:[%s2893_s1 + $0xa60] sm:$0xff]  ;;  %v393_v31 = vld [vmem:[%s2893_s1 + $0xae8] sm:$0xff] }
  0x93   :  { %920 = vmatpush.msra.mxu2 %v343_v32  ;;  %939 = vmatpush.msra.mxu3 %v360_v33  ;;  %v408_v32 = vld [vmem:[%s2893_s1 + $0xb60] sm:$0xff]  ;;  %v425_v33 = vld [vmem:[%s2893_s1 + $0xbe8] sm:$0xff] }
  0x94   :  { %881 = vmatpush.msra.mxu0 %v310_v34  ;;  %900 = vmatpush.msra.mxu1 %v327_v35  ;;  %v375_v34 = vld [vmem:[%s2893_s1 + $0xa58] sm:$0xff]  ;;  %v392_v35 = vld [vmem:[%s2893_s1 + $0xae0] sm:$0xff] }
  0x95   :  { %921 = vmatpush.msra.mxu2 %v342_v36  ;;  %940 = vmatpush.msra.mxu3 %v359_v37  ;;  %v407_v36 = vld [vmem:[%s2893_s1 + $0xb58] sm:$0xff]  ;;  %v424_v37 = vld [vmem:[%s2893_s1 + $0xbe0] sm:$0xff] }
  0x96   :  { %882 = vmatpush.msra.mxu0 %v309_v38  ;;  %901 = vmatpush.msra.mxu1 %v326_v39  ;;  %v374_v38 = vld [vmem:[%s2893_s1 + $0xa50] sm:$0xff]  ;;  %v391_v39 = vld [vmem:[%s2893_s1 + $0xad8] sm:$0xff] }
  0x97   :  { %922 = vmatpush.msra.mxu2 %v341_v40  ;;  %941 = vmatpush.msra.mxu3 %v358_v41  ;;  %v406_v40 = vld [vmem:[%s2893_s1 + $0xb50] sm:$0xff]  ;;  %v423_v41 = vld [vmem:[%s2893_s1 + $0xbd8] sm:$0xff] }
  0x98   :  { %883 = vmatpush.msra.mxu0 %v308_v42  ;;  %902 = vmatpush.msra.mxu1 %v325_v43  ;;  %v373_v42 = vld [vmem:[%s2893_s1 + $0xa48] sm:$0xff]  ;;  %v390_v43 = vld [vmem:[%s2893_s1 + $0xad0] sm:$0xff] }
  0x99   :  { %923 = vmatpush.msra.mxu2 %v340_v44  ;;  %942 = vmatpush.msra.mxu3 %v357_v45  ;;  %v405_v44 = vld [vmem:[%s2893_s1 + $0xb48] sm:$0xff]  ;;  %v422_v45 = vld [vmem:[%s2893_s1 + $0xbd0] sm:$0xff] }
  0x9a   :  { %884 = vmatpush.msra.mxu0 %v307_v46  ;;  %903 = vmatpush.msra.mxu1 %v324_v47  ;;  %v372_v46 = vld [vmem:[%s2893_s1 + $0xa40] sm:$0xff]  ;;  %v389_v47 = vld [vmem:[%s2893_s1 + $0xac8] sm:$0xff] }
  0x9b   :  { %924 = vmatpush.msra.mxu2 %v339_v48  ;;  %943 = vmatpush.msra.mxu3 %v356_v49  ;;  %v404_v48 = vld [vmem:[%s2893_s1 + $0xb40] sm:$0xff]  ;;  %v421_v49 = vld [vmem:[%s2893_s1 + $0xbc8] sm:$0xff] }
  0x9c   :  { %885 = vmatpush.msra.mxu0 %v306_v50  ;;  %904 = vmatpush.msra.mxu1 %v323_v51  ;;  %v371_v50 = vld [vmem:[%s2893_s1 + $0xa38] sm:$0xff]  ;;  %v388_v51 = vld [vmem:[%s2893_s1 + $0xac0] sm:$0xff] }
  0x9d   :  { %925 = vmatpush.msra.mxu2 %v338_v52  ;;  %944 = vmatpush.msra.mxu3 %v355_v53  ;;  %v403_v52 = vld [vmem:[%s2893_s1 + $0xb38] sm:$0xff]  ;;  %v420_v53 = vld [vmem:[%s2893_s1 + $0xbc0] sm:$0xff] }
  0x9e   :  { %886 = vmatpush.msra.mxu0 %v305_v54  ;;  %905 = vmatpush.msra.mxu1 %v322_v55  ;;  %v370_v54 = vld [vmem:[%s2893_s1 + $0xa30] sm:$0xff]  ;;  %v387_v55 = vld [vmem:[%s2893_s1 + $0xab8] sm:$0xff] }
  0x9f   :  { %926 = vmatpush.msra.mxu2 %v337_v56  ;;  %945 = vmatpush.msra.mxu3 %v354_v57  ;;  %v402_v56 = vld [vmem:[%s2893_s1 + $0xb30] sm:$0xff]  ;;  %v419_v57 = vld [vmem:[%s2893_s1 + $0xbb8] sm:$0xff] }
  0xa0   :  { %887 = vmatpush.msra.mxu0 %v304_v58  ;;  %906 = vmatpush.msra.mxu1 %v321_v59  ;;  %v369_v58 = vld [vmem:[%s2893_s1 + $0xa28] sm:$0xff]  ;;  %v386_v59 = vld [vmem:[%s2893_s1 + $0xab0] sm:$0xff] }
  0xa1   :  { %927 = vmatpush.msra.mxu2 %v336_v60  ;;  %946 = vmatpush.msra.mxu3 %v353_v61  ;;  %v401_v60 = vld [vmem:[%s2893_s1 + $0xb28] sm:$0xff]  ;;  %v418_v61 = vld [vmem:[%s2893_s1 + $0xbb0] sm:$0xff] }
  0xa2   :  { %888 = vmatpush.msra.mxu0 %v303_v62  ;;  %907 = vmatpush.msra.mxu1 %v320_v63  ;;  %v368_v62 = vld [vmem:[%s2893_s1 + $0xa20] sm:$0xff]  ;;  %v385_v63 = vld [vmem:[%s2893_s1 + $0xaa8] sm:$0xff] }
  0xa3   :  { %928 = vmatpush.msra.mxu2 %v335_v0  ;;  %947 = vmatpush.msra.mxu3 %v352_v1  ;;  %v400_v0 = vld [vmem:[%s2893_s1 + $0xb20] sm:$0xff]  ;;  %v417_v1 = vld [vmem:[%s2893_s1 + $0xba8] sm:$0xff] }
  0xa4   :  { %889 = vmatpush.msra.mxu0 %v302_v2  ;;  %908 = vmatpush.msra.mxu1 %v319_v3  ;;  %v367_v2 = vld [vmem:[%s2893_s1 + $0xa18] sm:$0xff]  ;;  %v384_v3 = vld [vmem:[%s2893_s1 + $0xaa0] sm:$0xff] }
  0xa5   :  { %929 = vmatpush.msra.mxu2 %v334_v4  ;;  %948 = vmatpush.msra.mxu3 %v351_v5  ;;  %v399_v4 = vld [vmem:[%s2893_s1 + $0xb18] sm:$0xff]  ;;  %v416_v5 = vld [vmem:[%s2893_s1 + $0xba0] sm:$0xff] }
  0xa6   :  { %890 = vmatpush.msra.mxu0 %v301_v6  ;;  %909 = vmatpush.msra.mxu1 %v318_v7  ;;  %v366_v6 = vld [vmem:[%s2893_s1 + $0xa10] sm:$0xff]  ;;  %v383_v7 = vld [vmem:[%s2893_s1 + $0xa98] sm:$0xff] }
  0xa7   :  { %930 = vmatpush.msra.mxu2 %v333_v8  ;;  %949 = vmatpush.msra.mxu3 %v350_v9  ;;  %v398_v8 = vld [vmem:[%s2893_s1 + $0xb10] sm:$0xff]  ;;  %v415_v9 = vld [vmem:[%s2893_s1 + $0xb98] sm:$0xff] }
  0xa8   :  { %891 = vmatpush.msra.mxu0 %v300_v10  ;;  %910 = vmatpush.msra.mxu1 %v317_v11  ;;  %v365_v10 = vld [vmem:[%s2893_s1 + $0xa08] sm:$0xff]  ;;  %v382_v11 = vld [vmem:[%s2893_s1 + $0xa90] sm:$0xff] }
  0xa9   :  { %931 = vmatpush.msra.mxu2 %v332_v12  ;;  %950 = vmatpush.msra.mxu3 %v349_v13  ;;  %v397_v12 = vld [vmem:[%s2893_s1 + $0xb08] sm:$0xff]  ;;  %v414_v13 = vld [vmem:[%s2893_s1 + $0xb90] sm:$0xff] }
  0xaa   :  { %892 = vmatmul.f32.vlgmr.msra.gmra.mxu0 %v28_v14  ;;  %932 = vmatmul.f32.vlgmr.msra.gmra.mxu2 %v30_v15  ;;  %v364_v14 = vld [vmem:[%s2893_s1 + $0xa00] sm:$0xff]  ;;  %v381_v15 = vld [vmem:[%s2893_s1 + $0xa88] sm:$0xff] }
  0xab   :  { %956 = vmatpush.msrb.mxu0 %v379_v16  ;;  %996 = vmatpush.msrb.mxu2 %v411_v17  ;;  %v396_v16 = vld [vmem:[%s2893_s1 + $0xb00] sm:$0xff]  ;;  %v413_v17 = vld [vmem:[%s2893_s1 + $0xb88] sm:$0xff] }
  0xac   :  { %911 = vmatpush.msra.mxu1 %v316_v18  ;;  %951 = vmatpush.msra.mxu3 %v348_v19  ;;  %v32_v18 = vld [vmem:[%s2892_s0 + $0xa0] sm:$0xff]  ;;  %v34_v19 = vld [vmem:[%s2892_s0 + $0xb0] sm:$0xff] }
  0xad   :  { %912 = vmatmul.f32.vlgmr.msra.gmra.mxu1 %v29_v20  ;;  %952 = vmatmul.f32.vlgmr.msra.gmra.mxu3 %v31_v21  ;;  %v443_v20 = vld [vmem:[%s2893_s1 + $0xc78] sm:$0xff] }
  0xae   :  { %957 = vmatpush.msrb.mxu0 %v378_v22  ;;  %976 = vmatpush.msrb.mxu1 %v395_v23  ;;  %v475_v21 = vld [vmem:[%s2893_s1 + $0xd78] sm:$0xff]  ;;  %v380_v22 = vld [vmem:[%s2893_s1 + $0xa80] sm:$0xff] }
  0xaf   :  { %997 = vmatpush.msrb.mxu2 %v410_v24  ;;  %1016 = vmatpush.msrb.mxu3 %v427_v25  ;;  %v412_v23 = vld [vmem:[%s2893_s1 + $0xb80] sm:$0xff]  ;;  %v33_v24 = vld [vmem:[%s2892_s0 + $0xa8] sm:$0xff]  ;;  %v35_v25 = vld [vmem:[%s2892_s0 + $0xb8] sm:$0xff] }
  0xb0   :  { %958 = vmatpush.msrb.mxu0 %v377_v26  ;;  %977 = vmatpush.msrb.mxu1 %v394_v27  ;;  %v442_v26 = vld [vmem:[%s2893_s1 + $0xc70] sm:$0xff]  ;;  %v459_v27 = vld [vmem:[%s2893_s1 + $0xcf8] sm:$0xff] }
  0xb1   :  { %998 = vmatpush.msrb.mxu2 %v409_v28  ;;  %1017 = vmatpush.msrb.mxu3 %v426_v29  ;;  %v474_v28 = vld [vmem:[%s2893_s1 + $0xd70] sm:$0xff]  ;;  %v491_v29 = vld [vmem:[%s2893_s1 + $0xdf8] sm:$0xff] }
  0xb2   :  { %959 = vmatpush.msrb.mxu0 %v376_v30  ;;  %978 = vmatpush.msrb.mxu1 %v393_v31  ;;  %v441_v30 = vld [vmem:[%s2893_s1 + $0xc68] sm:$0xff]  ;;  %v458_v31 = vld [vmem:[%s2893_s1 + $0xcf0] sm:$0xff] }
  0xb3   :  { %999 = vmatpush.msrb.mxu2 %v408_v32  ;;  %1018 = vmatpush.msrb.mxu3 %v425_v33  ;;  %v473_v32 = vld [vmem:[%s2893_s1 + $0xd68] sm:$0xff]  ;;  %v490_v33 = vld [vmem:[%s2893_s1 + $0xdf0] sm:$0xff] }
  0xb4   :  { %960 = vmatpush.msrb.mxu0 %v375_v34  ;;  %979 = vmatpush.msrb.mxu1 %v392_v35  ;;  %v440_v34 = vld [vmem:[%s2893_s1 + $0xc60] sm:$0xff]  ;;  %v457_v35 = vld [vmem:[%s2893_s1 + $0xce8] sm:$0xff] }
  0xb5   :  { %1000 = vmatpush.msrb.mxu2 %v407_v36  ;;  %1019 = vmatpush.msrb.mxu3 %v424_v37  ;;  %v472_v36 = vld [vmem:[%s2893_s1 + $0xd60] sm:$0xff]  ;;  %v489_v37 = vld [vmem:[%s2893_s1 + $0xde8] sm:$0xff] }
  0xb6   :  { %961 = vmatpush.msrb.mxu0 %v374_v38  ;;  %980 = vmatpush.msrb.mxu1 %v391_v39  ;;  %v439_v38 = vld [vmem:[%s2893_s1 + $0xc58] sm:$0xff]  ;;  %v456_v39 = vld [vmem:[%s2893_s1 + $0xce0] sm:$0xff] }
  0xb7   :  { %1001 = vmatpush.msrb.mxu2 %v406_v40  ;;  %1020 = vmatpush.msrb.mxu3 %v423_v41  ;;  %v471_v40 = vld [vmem:[%s2893_s1 + $0xd58] sm:$0xff]  ;;  %v488_v41 = vld [vmem:[%s2893_s1 + $0xde0] sm:$0xff] }
  0xb8   :  { %962 = vmatpush.msrb.mxu0 %v373_v42  ;;  %981 = vmatpush.msrb.mxu1 %v390_v43  ;;  %v438_v42 = vld [vmem:[%s2893_s1 + $0xc50] sm:$0xff]  ;;  %v455_v43 = vld [vmem:[%s2893_s1 + $0xcd8] sm:$0xff] }
  0xb9   :  { %1002 = vmatpush.msrb.mxu2 %v405_v44  ;;  %1021 = vmatpush.msrb.mxu3 %v422_v45  ;;  %v470_v44 = vld [vmem:[%s2893_s1 + $0xd50] sm:$0xff]  ;;  %v487_v45 = vld [vmem:[%s2893_s1 + $0xdd8] sm:$0xff] }
  0xba   :  { %963 = vmatpush.msrb.mxu0 %v372_v46  ;;  %982 = vmatpush.msrb.mxu1 %v389_v47  ;;  %v437_v46 = vld [vmem:[%s2893_s1 + $0xc48] sm:$0xff]  ;;  %v454_v47 = vld [vmem:[%s2893_s1 + $0xcd0] sm:$0xff] }
  0xbb   :  { %1003 = vmatpush.msrb.mxu2 %v404_v48  ;;  %1022 = vmatpush.msrb.mxu3 %v421_v49  ;;  %v469_v48 = vld [vmem:[%s2893_s1 + $0xd48] sm:$0xff]  ;;  %v486_v49 = vld [vmem:[%s2893_s1 + $0xdd0] sm:$0xff] }
  0xbc   :  { %964 = vmatpush.msrb.mxu0 %v371_v50  ;;  %983 = vmatpush.msrb.mxu1 %v388_v51  ;;  %v436_v50 = vld [vmem:[%s2893_s1 + $0xc40] sm:$0xff]  ;;  %v453_v51 = vld [vmem:[%s2893_s1 + $0xcc8] sm:$0xff] }
  0xbd   :  { %1004 = vmatpush.msrb.mxu2 %v403_v52  ;;  %1023 = vmatpush.msrb.mxu3 %v420_v53  ;;  %v468_v52 = vld [vmem:[%s2893_s1 + $0xd40] sm:$0xff]  ;;  %v485_v53 = vld [vmem:[%s2893_s1 + $0xdc8] sm:$0xff] }
  0xbe   :  { %965 = vmatpush.msrb.mxu0 %v370_v54  ;;  %984 = vmatpush.msrb.mxu1 %v387_v55  ;;  %v435_v54 = vld [vmem:[%s2893_s1 + $0xc38] sm:$0xff]  ;;  %v452_v55 = vld [vmem:[%s2893_s1 + $0xcc0] sm:$0xff] }
  0xbf   :  { %1005 = vmatpush.msrb.mxu2 %v402_v56  ;;  %1024 = vmatpush.msrb.mxu3 %v419_v57  ;;  %v467_v56 = vld [vmem:[%s2893_s1 + $0xd38] sm:$0xff]  ;;  %v484_v57 = vld [vmem:[%s2893_s1 + $0xdc0] sm:$0xff] }
  0xc0   :  { %966 = vmatpush.msrb.mxu0 %v369_v58  ;;  %985 = vmatpush.msrb.mxu1 %v386_v59  ;;  %v434_v58 = vld [vmem:[%s2893_s1 + $0xc30] sm:$0xff]  ;;  %v451_v59 = vld [vmem:[%s2893_s1 + $0xcb8] sm:$0xff] }
  0xc1   :  { %1006 = vmatpush.msrb.mxu2 %v401_v60  ;;  %1025 = vmatpush.msrb.mxu3 %v418_v61  ;;  %v466_v60 = vld [vmem:[%s2893_s1 + $0xd30] sm:$0xff]  ;;  %v483_v61 = vld [vmem:[%s2893_s1 + $0xdb8] sm:$0xff] }
  0xc2   :  { %967 = vmatpush.msrb.mxu0 %v368_v62  ;;  %986 = vmatpush.msrb.mxu1 %v385_v63  ;;  %v433_v62 = vld [vmem:[%s2893_s1 + $0xc28] sm:$0xff]  ;;  %v450_v63 = vld [vmem:[%s2893_s1 + $0xcb0] sm:$0xff] }
  0xc3   :  { %1007 = vmatpush.msrb.mxu2 %v400_v0  ;;  %1026 = vmatpush.msrb.mxu3 %v417_v1  ;;  %v465_v0 = vld [vmem:[%s2893_s1 + $0xd28] sm:$0xff]  ;;  %v482_v1 = vld [vmem:[%s2893_s1 + $0xdb0] sm:$0xff] }
  0xc4   :  { %968 = vmatpush.msrb.mxu0 %v367_v2  ;;  %987 = vmatpush.msrb.mxu1 %v384_v3  ;;  %v432_v2 = vld [vmem:[%s2893_s1 + $0xc20] sm:$0xff]  ;;  %v449_v3 = vld [vmem:[%s2893_s1 + $0xca8] sm:$0xff] }
  0xc5   :  { %1008 = vmatpush.msrb.mxu2 %v399_v4  ;;  %1027 = vmatpush.msrb.mxu3 %v416_v5  ;;  %v464_v4 = vld [vmem:[%s2893_s1 + $0xd20] sm:$0xff]  ;;  %v481_v5 = vld [vmem:[%s2893_s1 + $0xda8] sm:$0xff] }
  0xc6   :  { %969 = vmatpush.msrb.mxu0 %v366_v6  ;;  %988 = vmatpush.msrb.mxu1 %v383_v7  ;;  %v431_v6 = vld [vmem:[%s2893_s1 + $0xc18] sm:$0xff]  ;;  %v448_v7 = vld [vmem:[%s2893_s1 + $0xca0] sm:$0xff] }
  0xc7   :  { %1009 = vmatpush.msrb.mxu2 %v398_v8  ;;  %1028 = vmatpush.msrb.mxu3 %v415_v9  ;;  %v463_v8 = vld [vmem:[%s2893_s1 + $0xd18] sm:$0xff]  ;;  %v480_v9 = vld [vmem:[%s2893_s1 + $0xda0] sm:$0xff] }
  0xc8   :  { %970 = vmatpush.msrb.mxu0 %v365_v10  ;;  %989 = vmatpush.msrb.mxu1 %v382_v11  ;;  %v430_v10 = vld [vmem:[%s2893_s1 + $0xc10] sm:$0xff]  ;;  %v447_v11 = vld [vmem:[%s2893_s1 + $0xc98] sm:$0xff] }
  0xc9   :  { %1010 = vmatpush.msrb.mxu2 %v397_v12  ;;  %1029 = vmatpush.msrb.mxu3 %v414_v13  ;;  %v462_v12 = vld [vmem:[%s2893_s1 + $0xd10] sm:$0xff]  ;;  %v479_v13 = vld [vmem:[%s2893_s1 + $0xd98] sm:$0xff] }
  0xca   :  { %971 = vmatpush.msrb.mxu0 %v364_v14  ;;  %990 = vmatpush.msrb.mxu1 %v381_v15  ;;  %v429_v14 = vld [vmem:[%s2893_s1 + $0xc08] sm:$0xff]  ;;  %v446_v15 = vld [vmem:[%s2893_s1 + $0xc90] sm:$0xff] }
  0xcb   :  { %1011 = vmatpush.msrb.mxu2 %v396_v16  ;;  %1030 = vmatpush.msrb.mxu3 %v413_v17  ;;  %v461_v16 = vld [vmem:[%s2893_s1 + $0xd08] sm:$0xff]  ;;  %v478_v17 = vld [vmem:[%s2893_s1 + $0xd90] sm:$0xff] }
  0xcc   :  { %972 = vmatmul.f32.vlgmr.msrb.gmra.mxu0 %v32_v18  ;;  %1012 = vmatmul.f32.vlgmr.msrb.gmra.mxu2 %v34_v19  ;;  %v428_v18 = vld [vmem:[%s2893_s1 + $0xc00] sm:$0xff]  ;;  %v445_v19 = vld [vmem:[%s2893_s1 + $0xc88] sm:$0xff] }
  0xcd   :  { %1036 = vmatpush.msra.mxu0 %v443_v20  ;;  %1076 = vmatpush.msra.mxu2 %v475_v21  ;;  %v460_v20 = vld [vmem:[%s2893_s1 + $0xd00] sm:$0xff]  ;;  %v477_v21 = vld [vmem:[%s2893_s1 + $0xd88] sm:$0xff] }
  0xce   :  { %991 = vmatpush.msrb.mxu1 %v380_v22  ;;  %1031 = vmatpush.msrb.mxu3 %v412_v23  ;;  %v36_v22 = vld [vmem:[%s2892_s0 + $0xc0] sm:$0xff]  ;;  %v38_v23 = vld [vmem:[%s2892_s0 + $0xd0] sm:$0xff] }
  0xcf   :  { %992 = vmatmul.f32.vlgmr.msrb.gmra.mxu1 %v33_v24  ;;  %1032 = vmatmul.f32.vlgmr.msrb.gmra.mxu3 %v35_v25  ;;  %v507_v24 = vld [vmem:[%s2893_s1 + $0xe78] sm:$0xff] }
  0xd0   :  { %1037 = vmatpush.msra.mxu0 %v442_v26  ;;  %1056 = vmatpush.msra.mxu1 %v459_v27  ;;  %v539_v25 = vld [vmem:[%s2893_s1 + $0xf78] sm:$0xff]  ;;  %v444_v26 = vld [vmem:[%s2893_s1 + $0xc80] sm:$0xff] }
  0xd1   :  { %1077 = vmatpush.msra.mxu2 %v474_v28  ;;  %1096 = vmatpush.msra.mxu3 %v491_v29  ;;  %v476_v27 = vld [vmem:[%s2893_s1 + $0xd80] sm:$0xff]  ;;  %v37_v28 = vld [vmem:[%s2892_s0 + $0xc8] sm:$0xff]  ;;  %v39_v29 = vld [vmem:[%s2892_s0 + $0xd8] sm:$0xff] }
  0xd2   :  { %1038 = vmatpush.msra.mxu0 %v441_v30  ;;  %1057 = vmatpush.msra.mxu1 %v458_v31  ;;  %v506_v30 = vld [vmem:[%s2893_s1 + $0xe70] sm:$0xff]  ;;  %v523_v31 = vld [vmem:[%s2893_s1 + $0xef8] sm:$0xff] }
  0xd3   :  { %1078 = vmatpush.msra.mxu2 %v473_v32  ;;  %1097 = vmatpush.msra.mxu3 %v490_v33  ;;  %v538_v32 = vld [vmem:[%s2893_s1 + $0xf70] sm:$0xff]  ;;  %v555_v33 = vld [vmem:[%s2893_s1 + $0xff8] sm:$0xff] }
  0xd4   :  { %1039 = vmatpush.msra.mxu0 %v440_v34  ;;  %1058 = vmatpush.msra.mxu1 %v457_v35  ;;  %v505_v34 = vld [vmem:[%s2893_s1 + $0xe68] sm:$0xff]  ;;  %v522_v35 = vld [vmem:[%s2893_s1 + $0xef0] sm:$0xff] }
  0xd5   :  { %1079 = vmatpush.msra.mxu2 %v472_v36  ;;  %1098 = vmatpush.msra.mxu3 %v489_v37  ;;  %v537_v36 = vld [vmem:[%s2893_s1 + $0xf68] sm:$0xff]  ;;  %v554_v37 = vld [vmem:[%s2893_s1 + $0xff0] sm:$0xff] }
  0xd6   :  { %1040 = vmatpush.msra.mxu0 %v439_v38  ;;  %1059 = vmatpush.msra.mxu1 %v456_v39  ;;  %v504_v38 = vld [vmem:[%s2893_s1 + $0xe60] sm:$0xff]  ;;  %v521_v39 = vld [vmem:[%s2893_s1 + $0xee8] sm:$0xff] }
  0xd7   :  { %1080 = vmatpush.msra.mxu2 %v471_v40  ;;  %1099 = vmatpush.msra.mxu3 %v488_v41  ;;  %v536_v40 = vld [vmem:[%s2893_s1 + $0xf60] sm:$0xff]  ;;  %v553_v41 = vld [vmem:[%s2893_s1 + $0xfe8] sm:$0xff] }
  0xd8   :  { %1041 = vmatpush.msra.mxu0 %v438_v42  ;;  %1060 = vmatpush.msra.mxu1 %v455_v43  ;;  %v503_v42 = vld [vmem:[%s2893_s1 + $0xe58] sm:$0xff]  ;;  %v520_v43 = vld [vmem:[%s2893_s1 + $0xee0] sm:$0xff] }
  0xd9   :  { %1081 = vmatpush.msra.mxu2 %v470_v44  ;;  %1100 = vmatpush.msra.mxu3 %v487_v45  ;;  %v535_v44 = vld [vmem:[%s2893_s1 + $0xf58] sm:$0xff]  ;;  %v552_v45 = vld [vmem:[%s2893_s1 + $0xfe0] sm:$0xff] }
  0xda   :  { %1042 = vmatpush.msra.mxu0 %v437_v46  ;;  %1061 = vmatpush.msra.mxu1 %v454_v47  ;;  %v502_v46 = vld [vmem:[%s2893_s1 + $0xe50] sm:$0xff]  ;;  %v519_v47 = vld [vmem:[%s2893_s1 + $0xed8] sm:$0xff] }
  0xdb   :  { %1082 = vmatpush.msra.mxu2 %v469_v48  ;;  %1101 = vmatpush.msra.mxu3 %v486_v49  ;;  %v534_v48 = vld [vmem:[%s2893_s1 + $0xf50] sm:$0xff]  ;;  %v551_v49 = vld [vmem:[%s2893_s1 + $0xfd8] sm:$0xff] }
  0xdc   :  { %1043 = vmatpush.msra.mxu0 %v436_v50  ;;  %1062 = vmatpush.msra.mxu1 %v453_v51  ;;  %v501_v50 = vld [vmem:[%s2893_s1 + $0xe48] sm:$0xff]  ;;  %v518_v51 = vld [vmem:[%s2893_s1 + $0xed0] sm:$0xff] }
  0xdd   :  { %1083 = vmatpush.msra.mxu2 %v468_v52  ;;  %1102 = vmatpush.msra.mxu3 %v485_v53  ;;  %v533_v52 = vld [vmem:[%s2893_s1 + $0xf48] sm:$0xff]  ;;  %v550_v53 = vld [vmem:[%s2893_s1 + $0xfd0] sm:$0xff] }
  0xde   :  { %1044 = vmatpush.msra.mxu0 %v435_v54  ;;  %1063 = vmatpush.msra.mxu1 %v452_v55  ;;  %v500_v54 = vld [vmem:[%s2893_s1 + $0xe40] sm:$0xff]  ;;  %v517_v55 = vld [vmem:[%s2893_s1 + $0xec8] sm:$0xff] }
  0xdf   :  { %1084 = vmatpush.msra.mxu2 %v467_v56  ;;  %1103 = vmatpush.msra.mxu3 %v484_v57  ;;  %v532_v56 = vld [vmem:[%s2893_s1 + $0xf40] sm:$0xff]  ;;  %v549_v57 = vld [vmem:[%s2893_s1 + $0xfc8] sm:$0xff] }
  0xe0   :  { %1045 = vmatpush.msra.mxu0 %v434_v58  ;;  %1064 = vmatpush.msra.mxu1 %v451_v59  ;;  %v499_v58 = vld [vmem:[%s2893_s1 + $0xe38] sm:$0xff]  ;;  %v516_v59 = vld [vmem:[%s2893_s1 + $0xec0] sm:$0xff] }
  0xe1   :  { %1085 = vmatpush.msra.mxu2 %v466_v60  ;;  %1104 = vmatpush.msra.mxu3 %v483_v61  ;;  %v531_v60 = vld [vmem:[%s2893_s1 + $0xf38] sm:$0xff]  ;;  %v548_v61 = vld [vmem:[%s2893_s1 + $0xfc0] sm:$0xff] }
  0xe2   :  { %1046 = vmatpush.msra.mxu0 %v433_v62  ;;  %1065 = vmatpush.msra.mxu1 %v450_v63  ;;  %v498_v62 = vld [vmem:[%s2893_s1 + $0xe30] sm:$0xff]  ;;  %v515_v63 = vld [vmem:[%s2893_s1 + $0xeb8] sm:$0xff] }
  0xe3   :  { %1086 = vmatpush.msra.mxu2 %v465_v0  ;;  %1105 = vmatpush.msra.mxu3 %v482_v1  ;;  %v530_v0 = vld [vmem:[%s2893_s1 + $0xf30] sm:$0xff]  ;;  %v547_v1 = vld [vmem:[%s2893_s1 + $0xfb8] sm:$0xff] }
  0xe4   :  { %1047 = vmatpush.msra.mxu0 %v432_v2  ;;  %1066 = vmatpush.msra.mxu1 %v449_v3  ;;  %v497_v2 = vld [vmem:[%s2893_s1 + $0xe28] sm:$0xff]  ;;  %v514_v3 = vld [vmem:[%s2893_s1 + $0xeb0] sm:$0xff] }
  0xe5   :  { %1087 = vmatpush.msra.mxu2 %v464_v4  ;;  %1106 = vmatpush.msra.mxu3 %v481_v5  ;;  %v529_v4 = vld [vmem:[%s2893_s1 + $0xf28] sm:$0xff]  ;;  %v546_v5 = vld [vmem:[%s2893_s1 + $0xfb0] sm:$0xff] }
  0xe6   :  { %1048 = vmatpush.msra.mxu0 %v431_v6  ;;  %1067 = vmatpush.msra.mxu1 %v448_v7  ;;  %v496_v6 = vld [vmem:[%s2893_s1 + $0xe20] sm:$0xff]  ;;  %v513_v7 = vld [vmem:[%s2893_s1 + $0xea8] sm:$0xff] }
  0xe7   :  { %1088 = vmatpush.msra.mxu2 %v463_v8  ;;  %1107 = vmatpush.msra.mxu3 %v480_v9  ;;  %v528_v8 = vld [vmem:[%s2893_s1 + $0xf20] sm:$0xff]  ;;  %v545_v9 = vld [vmem:[%s2893_s1 + $0xfa8] sm:$0xff] }
  0xe8   :  { %1049 = vmatpush.msra.mxu0 %v430_v10  ;;  %1068 = vmatpush.msra.mxu1 %v447_v11  ;;  %v495_v10 = vld [vmem:[%s2893_s1 + $0xe18] sm:$0xff]  ;;  %v512_v11 = vld [vmem:[%s2893_s1 + $0xea0] sm:$0xff] }
  0xe9   :  { %1089 = vmatpush.msra.mxu2 %v462_v12  ;;  %1108 = vmatpush.msra.mxu3 %v479_v13  ;;  %v527_v12 = vld [vmem:[%s2893_s1 + $0xf18] sm:$0xff]  ;;  %v544_v13 = vld [vmem:[%s2893_s1 + $0xfa0] sm:$0xff] }
  0xea   :  { %1050 = vmatpush.msra.mxu0 %v429_v14  ;;  %1069 = vmatpush.msra.mxu1 %v446_v15  ;;  %v494_v14 = vld [vmem:[%s2893_s1 + $0xe10] sm:$0xff]  ;;  %v511_v15 = vld [vmem:[%s2893_s1 + $0xe98] sm:$0xff] }
  0xeb   :  { %1090 = vmatpush.msra.mxu2 %v461_v16  ;;  %1109 = vmatpush.msra.mxu3 %v478_v17  ;;  %v526_v16 = vld [vmem:[%s2893_s1 + $0xf10] sm:$0xff]  ;;  %v543_v17 = vld [vmem:[%s2893_s1 + $0xf98] sm:$0xff] }
  0xec   :  { %1051 = vmatpush.msra.mxu0 %v428_v18  ;;  %1070 = vmatpush.msra.mxu1 %v445_v19  ;;  %v493_v18 = vld [vmem:[%s2893_s1 + $0xe08] sm:$0xff]  ;;  %v510_v19 = vld [vmem:[%s2893_s1 + $0xe90] sm:$0xff] }
  0xed   :  { %1091 = vmatpush.msra.mxu2 %v460_v20  ;;  %1110 = vmatpush.msra.mxu3 %v477_v21  ;;  %v525_v20 = vld [vmem:[%s2893_s1 + $0xf08] sm:$0xff]  ;;  %v542_v21 = vld [vmem:[%s2893_s1 + $0xf90] sm:$0xff] }
  0xee   :  { %1052 = vmatmul.f32.vlgmr.msra.gmra.mxu0 %v36_v22  ;;  %1092 = vmatmul.f32.vlgmr.msra.gmra.mxu2 %v38_v23  ;;  %v492_v22 = vld [vmem:[%s2893_s1 + $0xe00] sm:$0xff]  ;;  %v509_v23 = vld [vmem:[%s2893_s1 + $0xe88] sm:$0xff] }
  0xef   :  { %1116 = vmatpush.msrb.mxu0 %v507_v24  ;;  %1156 = vmatpush.msrb.mxu2 %v539_v25  ;;  %v524_v24 = vld [vmem:[%s2893_s1 + $0xf00] sm:$0xff]  ;;  %v541_v25 = vld [vmem:[%s2893_s1 + $0xf88] sm:$0xff] }
  0xf0   :  { %1071 = vmatpush.msra.mxu1 %v444_v26  ;;  %1111 = vmatpush.msra.mxu3 %v476_v27  ;;  %v40_v26 = vld [vmem:[%s2892_s0 + $0xe0] sm:$0xff]  ;;  %v42_v27 = vld [vmem:[%s2892_s0 + $0xf0] sm:$0xff] }
  0xf1   :  { %1072 = vmatmul.f32.vlgmr.msra.gmra.mxu1 %v37_v28  ;;  %1112 = vmatmul.f32.vlgmr.msra.gmra.mxu3 %v39_v29  ;;  %v508_v28 = vld [vmem:[%s2893_s1 + $0xe80] sm:$0xff] }
  0xf2   :  { %1117 = vmatpush.msrb.mxu0 %v506_v30  ;;  %1136 = vmatpush.msrb.mxu1 %v523_v31  ;;  %v540_v29 = vld [vmem:[%s2893_s1 + $0xf80] sm:$0xff]  ;;  %v41_v30 = vld [vmem:[%s2892_s0 + $0xe8] sm:$0xff]  ;;  %v43_v31 = vld [vmem:[%s2892_s0 + $0xf8] sm:$0xff]  ;;  %s1241_s0 = smov [#allocation2]  }
  0xf3   :  { %1157 = vmatpush.msrb.mxu2 %v538_v32  ;;  %1176 = vmatpush.msrb.mxu3 %v555_v33  ;;  %v593_v32 = vpop.f32.mrf.mxu1  ;;  %v573_v33 = vpop.f32.mrf.mxu0  ;;  %s1203_s1 = sshll.u32 %s1241_s0, 4  ;;  %s1204_s1 = int_to_ptr.vmem [resolvable:$true] %s1203_s1 }
  0xf4   :  { %1118 = vmatpush.msrb.mxu0 %v505_v34  ;;  %1137 = vmatpush.msrb.mxu1 %v522_v35  ;;  %v594_v34 = vadd.f32 %v593_v32, %v573_v33  ;;  %v613_v35 = vpop.f32.mrf.mxu2 }
  0xf5   :  { %1158 = vmatpush.msrb.mxu2 %v537_v36  ;;  %1177 = vmatpush.msrb.mxu3 %v554_v37  ;;  %v633_v37 = vpop.f32.mrf.mxu3 }
  0xf6   :  { %1119 = vmatpush.msrb.mxu0 %v504_v38  ;;  %1138 = vmatpush.msrb.mxu1 %v521_v39  ;;  %v614_v36 = vadd.f32 %v613_v35, %v594_v34 }
  0xf7   :  { %1159 = vmatpush.msrb.mxu2 %v536_v40  ;;  %1178 = vmatpush.msrb.mxu3 %v553_v41 }
  0xf8   :  { %1120 = vmatpush.msrb.mxu0 %v503_v42  ;;  %1139 = vmatpush.msrb.mxu1 %v520_v43  ;;  %v634_v38 = vadd.f32 %v633_v37, %v614_v36 }
  0xf9   :  { %1160 = vmatpush.msrb.mxu2 %v535_v44  ;;  %1179 = vmatpush.msrb.mxu3 %v552_v45 }
  0xfa   :  { %1121 = vmatpush.msrb.mxu0 %v502_v46  ;;  %1140 = vmatpush.msrb.mxu1 %v519_v47 }
  0xfb   :  { %1161 = vmatpush.msrb.mxu2 %v534_v48  ;;  %1180 = vmatpush.msrb.mxu3 %v551_v49  ;;  %v653_v39 = vpop.f32.mrf.mxu0  ;;  %v673_v41 = vpop.f32.mrf.mxu1 }
  0xfc   :  { %1122 = vmatpush.msrb.mxu0 %v501_v50  ;;  %1141 = vmatpush.msrb.mxu1 %v518_v51  ;;  %v654_v40 = vadd.f32 %v653_v39, %v634_v38  ;;  %v693_v43 = vpop.f32.mrf.mxu2 }
  0xfd   :  { %1162 = vmatpush.msrb.mxu2 %v533_v52  ;;  %1181 = vmatpush.msrb.mxu3 %v550_v53  ;;  %v713_v45 = vpop.f32.mrf.mxu3 }
  0xfe   :  { %1123 = vmatpush.msrb.mxu0 %v500_v54  ;;  %1142 = vmatpush.msrb.mxu1 %v517_v55  ;;  %v674_v42 = vadd.f32 %v673_v41, %v654_v40 }
  0xff   :  { %1163 = vmatpush.msrb.mxu2 %v532_v56  ;;  %1182 = vmatpush.msrb.mxu3 %v549_v57 }
 0x100   :  { %1124 = vmatpush.msrb.mxu0 %v499_v58  ;;  %1143 = vmatpush.msrb.mxu1 %v516_v59  ;;  %v694_v44 = vadd.f32 %v693_v43, %v674_v42 }
 0x101   :  { %1164 = vmatpush.msrb.mxu2 %v531_v60  ;;  %1183 = vmatpush.msrb.mxu3 %v548_v61 }
 0x102   :  { %1125 = vmatpush.msrb.mxu0 %v498_v62  ;;  %1144 = vmatpush.msrb.mxu1 %v515_v63  ;;  %v714_v47 = vadd.f32 %v713_v45, %v694_v44 }
 0x103   :  { %1165 = vmatpush.msrb.mxu2 %v530_v0  ;;  %1184 = vmatpush.msrb.mxu3 %v547_v1  ;;  %v733_v46 = vpop.f32.mrf.mxu0  ;;  %v753_v49 = vpop.f32.mrf.mxu1 }
 0x104   :  { %1126 = vmatpush.msrb.mxu0 %v497_v2  ;;  %1145 = vmatpush.msrb.mxu1 %v514_v3  ;;  %v734_v48 = vadd.f32 %v733_v46, %v714_v47  ;;  %v773_v50 = vpop.f32.mrf.mxu2 }
 0x105   :  { %1166 = vmatpush.msrb.mxu2 %v529_v4  ;;  %1185 = vmatpush.msrb.mxu3 %v546_v5  ;;  %v793_v53 = vpop.f32.mrf.mxu3 }
 0x106   :  { %1127 = vmatpush.msrb.mxu0 %v496_v6  ;;  %1146 = vmatpush.msrb.mxu1 %v513_v7  ;;  %v754_v51 = vadd.f32 %v753_v49, %v734_v48 }
 0x107   :  { %1167 = vmatpush.msrb.mxu2 %v528_v8  ;;  %1186 = vmatpush.msrb.mxu3 %v545_v9 }
 0x108   :  { %1128 = vmatpush.msrb.mxu0 %v495_v10  ;;  %1147 = vmatpush.msrb.mxu1 %v512_v11  ;;  %v774_v52 = vadd.f32 %v773_v50, %v754_v51 }
 0x109   :  { %1168 = vmatpush.msrb.mxu2 %v527_v12  ;;  %1187 = vmatpush.msrb.mxu3 %v544_v13 }
 0x10a   :  { %1129 = vmatpush.msrb.mxu0 %v494_v14  ;;  %1148 = vmatpush.msrb.mxu1 %v511_v15  ;;  %v794_v55 = vadd.f32 %v793_v53, %v774_v52 }
 0x10b   :  { %1169 = vmatpush.msrb.mxu2 %v526_v16  ;;  %1188 = vmatpush.msrb.mxu3 %v543_v17  ;;  %v813_v54 = vpop.f32.mrf.mxu0  ;;  %v833_v57 = vpop.f32.mrf.mxu1 }
 0x10c   :  { %1130 = vmatpush.msrb.mxu0 %v493_v18  ;;  %1149 = vmatpush.msrb.mxu1 %v510_v19  ;;  %v814_v56 = vadd.f32 %v813_v54, %v794_v55  ;;  %v853_v58 = vpop.f32.mrf.mxu2 }
 0x10d   :  { %1170 = vmatpush.msrb.mxu2 %v525_v20  ;;  %1189 = vmatpush.msrb.mxu3 %v542_v21 }
 0x10e   :  { %1131 = vmatpush.msrb.mxu0 %v492_v22  ;;  %1150 = vmatpush.msrb.mxu1 %v509_v23  ;;  %v834_v59 = vadd.f32 %v833_v57, %v814_v56  ;;  %v873_v61 = vpop.f32.mrf.mxu3 }
 0x10f   :  { %1171 = vmatpush.msrb.mxu2 %v524_v24  ;;  %1190 = vmatpush.msrb.mxu3 %v541_v25 }
 0x110   :  { %1132 = vmatmul.f32.vlgmr.msrb.gmra.mxu0 %v40_v26  ;;  %1172 = vmatmul.f32.vlgmr.msrb.gmra.mxu2 %v42_v27  ;;  %v854_v60 = vadd.f32 %v853_v58, %v834_v59 }
 0x111   :  { %1151 = vmatpush.msrb.mxu1 %v508_v28  ;;  %1191 = vmatpush.msrb.mxu3 %v540_v29 }
 0x112   :  { %1152 = vmatmul.f32.vlgmr.msrb.gmra.mxu1 %v41_v30  ;;  %1192 = vmatmul.f32.vlgmr.msrb.gmra.mxu3 %v43_v31  ;;  %v874_v63 = vadd.f32 %v873_v61, %v854_v60 }
 0x127   :  { %v893_v62 = vpop.f32.mrf.mxu0 }
 0x128   :  { %v894_v0 = vadd.f32 %v893_v62, %v874_v63 }
 0x12a   :  { %v913_v1 = vpop.f32.mrf.mxu1 }
 0x12b   :  { %v914_v3 = vadd.f32 %v913_v1, %v894_v0 }
 0x12d   :  { %v933_v2 = vpop.f32.mrf.mxu2 }
 0x12e   :  { %v934_v4 = vadd.f32 %v933_v2, %v914_v3 }
 0x130   :  { %v953_v5 = vpop.f32.mrf.mxu3 }
 0x131   :  { %v954_v7 = vadd.f32 %v953_v5, %v934_v4 }
 0x149   :  { %v973_v6 = vpop.f32.mrf.mxu0 }
 0x14a   :  { %v974_v8 = vadd.f32 %v973_v6, %v954_v7 }
 0x14c   :  { %v993_v9 = vpop.f32.mrf.mxu1 }
 0x14d   :  { %v994_v11 = vadd.f32 %v993_v9, %v974_v8 }
 0x14f   :  { %v1013_v10 = vpop.f32.mrf.mxu2 }
 0x150   :  { %v1014_v12 = vadd.f32 %v1013_v10, %v994_v11 }
 0x152   :  { %v1033_v13 = vpop.f32.mrf.mxu3 }
 0x153   :  { %v1034_v15 = vadd.f32 %v1033_v13, %v1014_v12 }
 0x16b   :  { %v1053_v14 = vpop.f32.mrf.mxu0 }
 0x16c   :  { %v1054_v16 = vadd.f32 %v1053_v14, %v1034_v15 }
 0x16e   :  { %v1073_v17 = vpop.f32.mrf.mxu1 }
 0x16f   :  { %v1074_v19 = vadd.f32 %v1073_v17, %v1054_v16 }
 0x171   :  { %v1093_v18 = vpop.f32.mrf.mxu2 }
 0x172   :  { %v1094_v20 = vadd.f32 %v1093_v18, %v1074_v19 }
 0x174   :  { %v1113_v21 = vpop.f32.mrf.mxu3 }
 0x175   :  { %v1114_v22 = vadd.f32 %v1113_v21, %v1094_v20 }
 0x18d   :  { %v1133_v23 = vpop.f32.mrf.mxu0 }
 0x18e   :  { %v1134_v24 = vadd.f32 %v1133_v23, %v1114_v22 }
 0x18f   :  { %v1153_v25 = vpop.f32.mrf.mxu1 }
 0x190   :  { %v1154_v26 = vadd.f32 %v1153_v25, %v1134_v24 }
 0x193   :  { %v1173_v27 = vpop.f32.mrf.mxu2 }
 0x194   :  { %v1174_v28 = vadd.f32 %v1173_v27, %v1154_v26 }
 0x195   :  { %v1193_v29 = vpop.f32.mrf.mxu3 }
 0x196   :  { %v1194_v30 = vadd.f32 %v1193_v29, %v1174_v28 }
 0x198   :  { %1197 = vst.msk [vmem:[#allocation2] sm:$0xff] %vm1196_vm0, %v1194_v30 }
 0x199   :  { %1208 = dma.vmem_to_hbm [thread:$0]  %s1204_s1, 128, %s1206_s7, [#allocation3]  }
 0x19a   :  { %1239 = dma.done.wait [#allocation3], 128  }
 0x19b   :  { %1240 = vsyncadd [#allocation3], 4294967168 }
 0x19c   :  { %1213 = vsyncpa [#allocation3], 1 }

</bundles_post_ra>
